<compile_context>
chip_gen: v6e
topology: v6e:2x2x1
jax: 0.10.0
libtpu: 0.0.40
codegen_flags: <defaults>
</compile_context>

<pallas_src>
import jax
import jax.numpy as jnp
from jax.experimental import pallas as pl
from jax.experimental.pallas import tpu as pltpu


def _softmax_sublane(x):
    # x: (rows, TB) with batch in lanes; softmax over axis 0 (sublanes).
    x = x - jnp.max(x, axis=0, keepdims=True)
    e = jnp.exp(x)
    return e / jnp.sum(e, axis=0, keepdims=True)


def kvmemnn_kernel(m_ref, c_ref, q_ref, key_ref, val_ref, cands_ref,
                   w_ref, b_ref, out_ref):
    f32 = jnp.float32
    qv = q_ref[...].astype(f32)                                    # (E, TB)

    # Hop 1: attend over persona memory (E-contraction = sublane reduction).
    m = m_ref[...].astype(f32)                                     # (S, E, TB)
    p = _softmax_sublane(jnp.sum(m * qv[None, :, :], axis=1))      # (S, TB)
    c = c_ref[...].astype(f32)                                     # (S, E, TB)
    qv = jnp.sum(p[:, None, :] * c, axis=0) + qv                   # (E, TB)

    # Hop 2: attend over key/value memory.
    key = key_ref[...].astype(f32)                                 # (N, E, TB)
    ph = _softmax_sublane(jnp.sum(key * qv[None, :, :], axis=1))   # (N, TB)
    val = val_ref[...].astype(f32)                                 # (N, E, TB)
    qv = jnp.sum(ph[:, None, :] * val, axis=0) + qv                # (E, TB)

    # Linear: (E_out, E_in) @ (E_in, TB) on the MXU (tiny; MXU slack is free).
    qv = jnp.dot(w_ref[...], qv, preferred_element_type=f32) + b_ref[...]

    # Candidate scores -> lane-dense (n_cands, TB) store.
    cands = cands_ref[...].astype(f32)                             # (C, E, TB)
    out_ref[...] = jnp.sum(cands * qv[None, :, :], axis=1).astype(out_ref.dtype)


def kvmemnn_forward(q_ids, persona_ids, key_ids, val_ids, cand_ids, params,
                    mem_len, mem_size, embd_size, batch_tile=128,
                    storage_dtype=jnp.bfloat16):
    A1, A2, W_w, W_b = params["A1"], params["A2"], params["W_w"], params["W_b"]
    B = q_ids.shape[0]
    E = embd_size
    n_cands = cand_ids.shape[1]
    n_kv = key_ids.shape[1]

    # --- glue in plain JAX: embedding gathers + mem_len bag-of-words sums,
    # accumulated in f32, then cast to the (bf16) storage dtype and laid out
    # batch-last (lane-major batch).
    m = A1[persona_ids].sum(axis=2)       # (B, mem_size, E)
    c = A2[persona_ids].sum(axis=2)       # (B, mem_size, E)
    cands = A1[cand_ids].sum(axis=2)      # (B, n_cands, E)
    q = A1[q_ids].sum(axis=1)             # (B, E)
    key = A2[key_ids].sum(axis=2)         # (B, n_kv, E)
    val = A2[val_ids].sum(axis=2)         # (B, n_kv, E)

    def to_lane_major(a):                 # (B, ..., E) -> (..., E, B)
        perm = tuple(range(1, a.ndim)) + (0,)
        return jnp.transpose(a.astype(storage_dtype), perm)

    m, c, cands, key, val, q = map(to_lane_major, (m, c, cands, key, val, q))

    # --- batch tile: multiple of the 128-lane width; keep >= 2 grid blocks
    # when the batch allows it (both v7x TensorCores via the parallel axis).
    TB = max(128, 128 * (int(batch_tile) // 128))
    while TB > 128 and pl.cdiv(B, TB) < 2:
        TB -= 128
    n_blocks = pl.cdiv(B, TB)
    B_pad = n_blocks * TB
    pad = B_pad - B
    if pad:
        def pad_last(a):
            return jnp.pad(a, [(0, 0)] * (a.ndim - 1) + [(0, pad)])
        m, c, cands, key, val, q = map(pad_last, (m, c, cands, key, val, q))

    w = W_w.astype(jnp.float32)                    # (E_out, E_in): no transpose needed
    wb = W_b.reshape(E, 1).astype(jnp.float32)     # bias per output feature

    # --- VMEM budget (double-buffered blocks) & cost hint.
    itm = jnp.dtype(storage_dtype).itemsize
    blk_in = ((2 * mem_size + 2 * n_kv + n_cands + 1) * E * TB) * itm + (E * E + E) * 4
    blk_out = n_cands * TB * 4
    vmem_need = 2 * (blk_in + blk_out) + (1 << 20)
    # Cap well under v7x's 64 MiB physical VMEM (v5e/v6e have 128 MiB).
    vmem_limit = int(min(48 << 20, max(16 << 20, vmem_need)))

    flops = int(2 * B_pad * E * (2 * mem_size + 2 * n_kv + n_cands + E))
    transcendentals = int(B_pad * (mem_size + n_kv))
    bytes_accessed = int(
        sum(int(a.size) * a.dtype.itemsize for a in (m, c, cands, key, val, q))
        + (E * E + E) * 4 + n_cands * B_pad * 4)

    out = pl.pallas_call(
        kvmemnn_kernel,
        out_shape=jax.ShapeDtypeStruct((n_cands, B_pad), jnp.float32),
        grid_spec=pltpu.PrefetchScalarGridSpec(
            num_scalar_prefetch=0,
            grid=(n_blocks,),
            in_specs=[
                pl.BlockSpec((mem_size, E, TB), lambda b: (0, 0, b)),
                pl.BlockSpec((mem_size, E, TB), lambda b: (0, 0, b)),
                pl.BlockSpec((E, TB), lambda b: (0, b)),
                pl.BlockSpec((n_kv, E, TB), lambda b: (0, 0, b)),
                pl.BlockSpec((n_kv, E, TB), lambda b: (0, 0, b)),
                pl.BlockSpec((n_cands, E, TB), lambda b: (0, 0, b)),
                pl.BlockSpec((E, E), lambda b: (0, 0)),
                pl.BlockSpec((E, 1), lambda b: (0, 0)),
            ],
            out_specs=pl.BlockSpec((n_cands, TB), lambda b: (0, b)),
        ),
        compiler_params=pltpu.CompilerParams(
            dimension_semantics=("parallel",),
            vmem_limit_bytes=vmem_limit),
        cost_estimate=pl.CostEstimate(
            flops=flops, transcendentals=transcendentals,
            bytes_accessed=bytes_accessed),
    )(m, c, q, key, val, cands, w, wb)

    # Back to the module's (B, n_cands) convention; drop batch padding.
    return out[:, :B].T


def reference_forward(q_ids, persona_ids, key_ids, val_ids, cand_ids, params,
                      mem_len, mem_size, E, storage_dtype=jnp.float32):
    # Pure-JAX mirror of the PyTorch forward. storage_dtype lets us reproduce
    # the kernel's bf16 storage of the pre-summed tensors for a tight check.
    A1, A2, W_w, W_b = params["A1"], params["A2"], params["W_w"], params["W_b"]
    hi = jax.lax.Precision.HIGHEST

    def st(x):
        return x.astype(storage_dtype).astype(jnp.float32)

    m = st(A1[persona_ids].sum(axis=2))
    c = st(A2[persona_ids].sum(axis=2))
    cands = st(A1[cand_ids].sum(axis=2))
    q = st(A1[q_ids].sum(axis=1))
    key = st(A2[key_ids].sum(axis=2))
    val = st(A2[val_ids].sum(axis=2))

    p = jax.nn.softmax(jnp.einsum('bme,be->bm', m, q, precision=hi), axis=-1)
    q = jnp.einsum('bm,bme->be', p, c, precision=hi) + q
    ph = jax.nn.softmax(jnp.einsum('bne,be->bn', key, q, precision=hi), axis=-1)
    q = jnp.einsum('bn,bne->be', ph, val, precision=hi) + q
    q = jnp.dot(q, W_w.T, precision=hi) + W_b.reshape(-1)
    return jnp.einsum('bce,be->bc', cands, q, precision=hi)


if __name__ == "__main__":
    # Small, deterministic problem.
    B = 2
    mem_len = 6
    mem_size = 8
    embd_size = 32
    vocab_size = 50
    n_kv = 5
    q_len = 7
    n_cands = 20

    root = jax.random.PRNGKey(0)
    k_a1, k_a2, k_w, k_b, k_q, k_p, k_k, k_v, k_c = jax.random.split(root, 9)

    params = {
        "A1": jax.random.normal(k_a1, (vocab_size, embd_size), jnp.float32) * 0.1,
        "A2": jax.random.normal(k_a2, (vocab_size, embd_size), jnp.float32) * 0.1,
        "W_w": jax.random.normal(k_w, (embd_size, embd_size), jnp.float32) * 0.1,
        "W_b": jax.random.normal(k_b, (1, embd_size), jnp.float32) * 0.1,
    }

    q_ids = jax.random.randint(k_q, (B, q_len), 0, vocab_size, jnp.int32)
    persona_ids = jax.random.randint(k_p, (B, mem_size, mem_len), 0, vocab_size, jnp.int32)
    key_ids = jax.random.randint(k_k, (B, n_kv, mem_len), 0, vocab_size, jnp.int32)
    val_ids = jax.random.randint(k_v, (B, n_kv, mem_len), 0, vocab_size, jnp.int32)
    cand_ids = jax.random.randint(k_c, (B, n_cands, mem_len), 0, vocab_size, jnp.int32)

    out = kvmemnn_forward(q_ids, persona_ids, key_ids, val_ids, cand_ids, params,
                          mem_len, mem_size, embd_size)
    out = jax.block_until_ready(out)
    assert out.shape == (B, n_cands)

    # Tight check: reference fed the same bf16-quantized pre-summed tensors
    # (validates the in-kernel math independent of the storage dtype choice).
    ref_q = reference_forward(q_ids, persona_ids, key_ids, val_ids, cand_ids, params,
                              mem_len, mem_size, embd_size,
                              storage_dtype=jnp.bfloat16)
    assert jnp.allclose(out, ref_q, atol=5e-3, rtol=5e-3), "mismatch vs bf16-input reference"

    # Semantic check vs the full-f32 reference (bf16 storage is the only delta).
    ref = reference_forward(q_ids, persona_ids, key_ids, val_ids, cand_ids, params,
                            mem_len, mem_size, embd_size,
                            storage_dtype=jnp.float32)
    assert jnp.allclose(out, ref, atol=3e-2, rtol=3e-2), "mismatch vs f32 reference"

    print("KERNEL_OK")
</pallas_src>

<mosaic_0001>
module attributes {stable_mosaic.version = 11 : i64} {
  func.func @kvmemnn_kernel(%arg0: i32, %arg1: memref<8x32x128xbf16, #tpu.memory_space<vmem>>, %arg2: memref<8x32x128xbf16, #tpu.memory_space<vmem>>, %arg3: memref<32x128xbf16, #tpu.memory_space<vmem>>, %arg4: memref<5x32x128xbf16, #tpu.memory_space<vmem>>, %arg5: memref<5x32x128xbf16, #tpu.memory_space<vmem>>, %arg6: memref<20x32x128xbf16, #tpu.memory_space<vmem>>, %arg7: memref<32x32xf32, #tpu.memory_space<vmem>>, %arg8: memref<32x1xf32, #tpu.memory_space<vmem>>, %arg9: memref<20x128xf32, #tpu.memory_space<vmem>>) attributes {dimension_semantics = [#tpu.dimension_semantics<parallel>], iteration_bounds = array<i64: 1>, scalar_prefetch = 0 : i64, scratch_operands = 0 : i64, tpu.core_type = #tpu.core_type<tc>, window_params = [{transform_indices = @transform_0, window_bounds = array<i64: 8, 32, 128>}, {transform_indices = @transform_1, window_bounds = array<i64: 8, 32, 128>}, {transform_indices = @transform_2, window_bounds = array<i64: 32, 128>}, {transform_indices = @transform_3, window_bounds = array<i64: 5, 32, 128>}, {transform_indices = @transform_4, window_bounds = array<i64: 5, 32, 128>}, {transform_indices = @transform_5, window_bounds = array<i64: 20, 32, 128>}, {pipeline_mode = #tpu.pipeline_mode<synchronous>, transform_indices = @transform_6, window_bounds = array<i64: 32, 32>}, {pipeline_mode = #tpu.pipeline_mode<synchronous>, transform_indices = @transform_7, window_bounds = array<i64: 32, 1>}, {transform_indices = @transform_8, window_bounds = array<i64: 20, 128>}]} {
    %c0 = arith.constant 0 : index
    %c0_0 = arith.constant 0 : index
    %0 = vector.load %arg3[%c0, %c0_0] : memref<32x128xbf16, #tpu.memory_space<vmem>>, vector<32x128xbf16>
    %1 = arith.extf %0 : vector<32x128xbf16> to vector<32x128xf32>
    %c0_1 = arith.constant 0 : index
    %c0_2 = arith.constant 0 : index
    %c0_3 = arith.constant 0 : index
    %2 = vector.load %arg1[%c0_1, %c0_2, %c0_3] : memref<8x32x128xbf16, #tpu.memory_space<vmem>>, vector<8x32x128xbf16>
    %3 = arith.extf %2 : vector<8x32x128xbf16> to vector<8x32x128xf32>
    %4 = vector.shape_cast %1 : vector<32x128xf32> to vector<1x32x128xf32>
    %5 = vector.broadcast %4 : vector<1x32x128xf32> to vector<8x32x128xf32>
    %6 = arith.mulf %3, %5 : vector<8x32x128xf32>
    %cst = arith.constant dense<0.000000e+00> : vector<8x128xf32>
    %7 = vector.multi_reduction <add>, %6, %cst [1] : vector<8x32x128xf32> to vector<8x128xf32>
    %cst_4 = arith.constant dense<0xFF800000> : vector<128xf32>
    %8 = vector.multi_reduction <maximumf>, %7, %cst_4 [0] : vector<8x128xf32> to vector<128xf32>
    %9 = vector.shape_cast %8 : vector<128xf32> to vector<1x128xf32>
    %10 = vector.broadcast %9 : vector<1x128xf32> to vector<8x128xf32>
    %11 = arith.subf %7, %10 : vector<8x128xf32>
    %12 = math.exp %11 : vector<8x128xf32>
    %cst_5 = arith.constant dense<0.000000e+00> : vector<128xf32>
    %13 = vector.multi_reduction <add>, %12, %cst_5 [0] : vector<8x128xf32> to vector<128xf32>
    %14 = vector.shape_cast %13 : vector<128xf32> to vector<1x128xf32>
    %15 = vector.broadcast %14 : vector<1x128xf32> to vector<8x128xf32>
    %16 = arith.divf %12, %15 : vector<8x128xf32>
    %c0_6 = arith.constant 0 : index
    %c0_7 = arith.constant 0 : index
    %c0_8 = arith.constant 0 : index
    %17 = vector.load %arg2[%c0_6, %c0_7, %c0_8] : memref<8x32x128xbf16, #tpu.memory_space<vmem>>, vector<8x32x128xbf16>
    %18 = arith.extf %17 : vector<8x32x128xbf16> to vector<8x32x128xf32>
    %19 = vector.shape_cast %16 : vector<8x128xf32> to vector<8x1x128xf32>
    %20 = vector.broadcast %19 : vector<8x1x128xf32> to vector<8x32x128xf32>
    %21 = arith.mulf %20, %18 : vector<8x32x128xf32>
    %cst_9 = arith.constant dense<0.000000e+00> : vector<32x128xf32>
    %22 = vector.multi_reduction <add>, %21, %cst_9 [0] : vector<8x32x128xf32> to vector<32x128xf32>
    %23 = arith.addf %22, %1 : vector<32x128xf32>
    %c0_10 = arith.constant 0 : index
    %c0_11 = arith.constant 0 : index
    %c0_12 = arith.constant 0 : index
    %24 = vector.load %arg4[%c0_10, %c0_11, %c0_12] : memref<5x32x128xbf16, #tpu.memory_space<vmem>>, vector<5x32x128xbf16>
    %25 = arith.extf %24 : vector<5x32x128xbf16> to vector<5x32x128xf32>
    %26 = vector.shape_cast %23 : vector<32x128xf32> to vector<1x32x128xf32>
    %27 = vector.broadcast %26 : vector<1x32x128xf32> to vector<5x32x128xf32>
    %28 = arith.mulf %25, %27 : vector<5x32x128xf32>
    %cst_13 = arith.constant dense<0.000000e+00> : vector<5x128xf32>
    %29 = vector.multi_reduction <add>, %28, %cst_13 [1] : vector<5x32x128xf32> to vector<5x128xf32>
    %cst_14 = arith.constant dense<0xFF800000> : vector<128xf32>
    %30 = vector.multi_reduction <maximumf>, %29, %cst_14 [0] : vector<5x128xf32> to vector<128xf32>
    %31 = vector.shape_cast %30 : vector<128xf32> to vector<1x128xf32>
    %32 = vector.broadcast %31 : vector<1x128xf32> to vector<5x128xf32>
    %33 = arith.subf %29, %32 : vector<5x128xf32>
    %34 = math.exp %33 : vector<5x128xf32>
    %cst_15 = arith.constant dense<0.000000e+00> : vector<128xf32>
    %35 = vector.multi_reduction <add>, %34, %cst_15 [0] : vector<5x128xf32> to vector<128xf32>
    %36 = vector.shape_cast %35 : vector<128xf32> to vector<1x128xf32>
    %37 = vector.broadcast %36 : vector<1x128xf32> to vector<5x128xf32>
    %38 = arith.divf %34, %37 : vector<5x128xf32>
    %c0_16 = arith.constant 0 : index
    %c0_17 = arith.constant 0 : index
    %c0_18 = arith.constant 0 : index
    %39 = vector.load %arg5[%c0_16, %c0_17, %c0_18] : memref<5x32x128xbf16, #tpu.memory_space<vmem>>, vector<5x32x128xbf16>
    %40 = arith.extf %39 : vector<5x32x128xbf16> to vector<5x32x128xf32>
    %41 = vector.shape_cast %38 : vector<5x128xf32> to vector<5x1x128xf32>
    %42 = vector.broadcast %41 : vector<5x1x128xf32> to vector<5x32x128xf32>
    %43 = arith.mulf %42, %40 : vector<5x32x128xf32>
    %cst_19 = arith.constant dense<0.000000e+00> : vector<32x128xf32>
    %44 = vector.multi_reduction <add>, %43, %cst_19 [0] : vector<5x32x128xf32> to vector<32x128xf32>
    %45 = arith.addf %44, %23 : vector<32x128xf32>
    %c0_20 = arith.constant 0 : index
    %c0_21 = arith.constant 0 : index
    %46 = vector.load %arg7[%c0_20, %c0_21] : memref<32x32xf32, #tpu.memory_space<vmem>>, vector<32x32xf32>
    %cst_22 = arith.constant dense<0.000000e+00> : vector<32x128xf32>
    %47 = tpu.matmul %46, %45, %cst_22 {dimension_numbers = #tpu.dot_dimension_numbers<[1], [0], [0], [1], [0, 0, 1, 1], [], []>} : vector<32x32xf32>, vector<32x128xf32>, vector<32x128xf32> -> vector<32x128xf32>
    %c0_23 = arith.constant 0 : index
    %c0_24 = arith.constant 0 : index
    %48 = vector.load %arg8[%c0_23, %c0_24] : memref<32x1xf32, #tpu.memory_space<vmem>>, vector<32x1xf32>
    %49 = vector.broadcast %48 : vector<32x1xf32> to vector<32x128xf32>
    %50 = arith.addf %47, %49 : vector<32x128xf32>
    %c0_25 = arith.constant 0 : index
    %c0_26 = arith.constant 0 : index
    %c0_27 = arith.constant 0 : index
    %51 = vector.load %arg6[%c0_25, %c0_26, %c0_27] : memref<20x32x128xbf16, #tpu.memory_space<vmem>>, vector<20x32x128xbf16>
    %52 = arith.extf %51 : vector<20x32x128xbf16> to vector<20x32x128xf32>
    %53 = vector.shape_cast %50 : vector<32x128xf32> to vector<1x32x128xf32>
    %54 = vector.broadcast %53 : vector<1x32x128xf32> to vector<20x32x128xf32>
    %55 = arith.mulf %52, %54 : vector<20x32x128xf32>
    %cst_28 = arith.constant dense<0.000000e+00> : vector<20x128xf32>
    %56 = vector.multi_reduction <add>, %55, %cst_28 [1] : vector<20x32x128xf32> to vector<20x128xf32>
    %c0_29 = arith.constant 0 : index
    %c0_30 = arith.constant 0 : index
    %57 = vector.load %arg9[%c0_29, %c0_30] : memref<20x128xf32, #tpu.memory_space<vmem>>, vector<20x128xf32>
    tpu.vector_store %arg9[%c0_29, %c0_30], %56 {strides = array<i32>} : memref<20x128xf32, #tpu.memory_space<vmem>>, vector<20x128xf32>,
    return
  }
  func.func @transform_0(%arg0: i32) -> (i32, i32, i32) {
    %c0_i32 = arith.constant 0 : i32
    %c0_i32_0 = arith.constant 0 : i32
    %c0_i32_1 = arith.constant 0 : i32
    return %c0_i32, %c0_i32_0, %arg0 : i32, i32, i32
  }
  func.func @transform_1(%arg0: i32) -> (i32, i32, i32) {
    %c0_i32 = arith.constant 0 : i32
    %c0_i32_0 = arith.constant 0 : i32
    %c0_i32_1 = arith.constant 0 : i32
    return %c0_i32, %c0_i32_0, %arg0 : i32, i32, i32
  }
  func.func @transform_2(%arg0: i32) -> (i32, i32) {
    %c0_i32 = arith.constant 0 : i32
    %c0_i32_0 = arith.constant 0 : i32
    return %c0_i32, %arg0 : i32, i32
  }
  func.func @transform_3(%arg0: i32) -> (i32, i32, i32) {
    %c0_i32 = arith.constant 0 : i32
    %c0_i32_0 = arith.constant 0 : i32
    %c0_i32_1 = arith.constant 0 : i32
    return %c0_i32, %c0_i32_0, %arg0 : i32, i32, i32
  }
  func.func @transform_4(%arg0: i32) -> (i32, i32, i32) {
    %c0_i32 = arith.constant 0 : i32
    %c0_i32_0 = arith.constant 0 : i32
    %c0_i32_1 = arith.constant 0 : i32
    return %c0_i32, %c0_i32_0, %arg0 : i32, i32, i32
  }
  func.func @transform_5(%arg0: i32) -> (i32, i32, i32) {
    %c0_i32 = arith.constant 0 : i32
    %c0_i32_0 = arith.constant 0 : i32
    %c0_i32_1 = arith.constant 0 : i32
    return %c0_i32, %c0_i32_0, %arg0 : i32, i32, i32
  }
  func.func @transform_6(%arg0: i32) -> (i32, i32) {
    %c0_i32 = arith.constant 0 : i32
    %c0_i32_0 = arith.constant 0 : i32
    %c0_i32_1 = arith.constant 0 : i32
    return %c0_i32, %c0_i32_0 : i32, i32
  }
  func.func @transform_7(%arg0: i32) -> (i32, i32) {
    %c0_i32 = arith.constant 0 : i32
    %c0_i32_0 = arith.constant 0 : i32
    %c0_i32_1 = arith.constant 0 : i32
    return %c0_i32, %c0_i32_0 : i32, i32
  }
  func.func @transform_8(%arg0: i32) -> (i32, i32) {
    %c0_i32 = arith.constant 0 : i32
    %c0_i32_0 = arith.constant 0 : i32
    return %c0_i32, %arg0 : i32, i32
  }
}

</mosaic_0001>

<bundles_post_ra>
// kernel: tpu_custom_call.1
= control target key start
LH: loop header
LB: loop body
LE: loop exit
PB: predicated region body
PF: predicated region fallthrough
CT: control target
= control target key end

     0   :  { %13 = vsyncpa [#allocation3], 0  ;;  %s3131_s0 = inlined_call_operand.hbm [shape: bf16[8,32,128], index: 0, kind: input, shape index: {}]   ;;  %s3132_s1 = inlined_call_operand.hbm [shape: bf16[8,32,128], index: 1, kind: input, shape index: {}]   ;;  %s3133_s2 = inlined_call_operand.hbm [shape: bf16[32,128], index: 2, kind: input, shape index: {}]   ;;  %s3134_s3 = inlined_call_operand.hbm [shape: bf16[5,32,128], index: 3, kind: input, shape index: {}]   ;;  %s3135_s4 = inlined_call_operand.hbm [shape: bf16[5,32,128], index: 4, kind: input, shape index: {}]   ;;  %s3136_s5 = inlined_call_operand.hbm [shape: bf16[20,32,128], index: 5, kind: input, shape index: {}]   ;;  %s3137_s6 = inlined_call_operand.vmem [shape: f32[32,32], index: 6, kind: input, shape index: {}]   ;;  %s3138_s7 = inlined_call_operand.vmem [shape: f32[32,1], index: 7, kind: input, shape index: {}]   ;;  %s3139_s8 = inlined_call_operand.hbm [shape: f32[20,128], index: 8, kind: output, shape index: {}]  }
   0x1   :  { %14 = vsyncpa [#allocation6], 0 }
   0x2   :  { %15 = vsyncpa [#allocation9], 0 }
   0x3   :  { %16 = vsyncpa [#allocation12], 0 }
   0x4   :  { %17 = vsyncpa [#allocation4], 0  ;;  %s2085_s27 = smov [#allocation5]   ;;  %s2086_s29 = smov [#allocation8]  }
   0x5   :  { %s35_s28 = sshll.u32 %s2085_s27, 4  ;;  %s59_s30 = sshll.u32 %s2086_s29, 4  ;;  %s36_s28 = int_to_ptr.vmem [resolvable:$true] %s35_s28  ;;  %s60_s30 = int_to_ptr.vmem [resolvable:$true] %s59_s30 }
   0x6   :  { %s1943_s9 = scalar_lea.vmem %s36_s28, 2048  ;;  %p1948_p1 = scmp.lt.s32.totalorder %s36_s28, %s36_s28 }
   0x7   :  { %p1944_p0 = scmp.ne.s32.totalorder %s36_s28, %s1943_s9  ;;  %p1949_p2 = scmp.lt.s32.totalorder %s1943_s9, %s1943_s9 }
   0x9   :  { %p1950_p3 = por %p1949_p2, %p1948_p1 }
   0xb   :  { %p1951_p4 = pnand %p1950_p3, %p1944_p0 }
   0xd   :  { %1954 = shalt.err (!%p1951_p4)
}
   0xe   :  { %s2087_s10 = smov 64   ;;  %s2088_s11 = smov 4  }
   0xf   :  { %41 = dma.hbm_to_vmem [thread:$0]  %s3132_s1, 2048, %s36_s28, [#allocation6], %s2087_s10, %s2087_s10, %s2088_s11  }
  0x10   :  { %s1963_s14 = scalar_lea.vmem %s60_s30, 1280  ;;  %p1968_p6 = scmp.lt.s32.totalorder %s60_s30, %s60_s30 }
  0x11   :  { %p1964_p5 = scmp.ne.s32.totalorder %s60_s30, %s1963_s14  ;;  %p1969_p7 = scmp.lt.s32.totalorder %s1963_s14, %s1963_s14 }
  0x13   :  { %p1970_p8 = por %p1969_p7, %p1968_p6 }
  0x15   :  { %p1971_p9 = pnand %p1970_p8, %p1964_p5 }
  0x17   :  { %1974 = shalt.err (!%p1971_p9)
}
  0x18   :  { %65 = dma.hbm_to_vmem [thread:$0]  %s3134_s3, 1280, %s60_s30, [#allocation9], %s2087_s10, %s2087_s10, %s2088_s11  }
  0x19   :  { %s2089_s17 = smov [#allocation2]   ;;  %s2090_s19 = smov [#allocation7]  }
  0x1a   :  { %s23_s18 = sshll.u32 %s2089_s17, 4  ;;  %s47_s20 = sshll.u32 %s2090_s19, 4  ;;  %s24_s18 = int_to_ptr.vmem [resolvable:$true] %s23_s18  ;;  %s48_s20 = int_to_ptr.vmem [resolvable:$true] %s47_s20 }
  0x1b   :  { %s1983_s1 = scalar_lea.vmem %s24_s18, 2048  ;;  %p1988_p11 = scmp.lt.s32.totalorder %s24_s18, %s24_s18 }
  0x1c   :  { %p1984_p10 = scmp.ne.s32.totalorder %s24_s18, %s1983_s1  ;;  %p1989_p12 = scmp.lt.s32.totalorder %s1983_s1, %s1983_s1 }
  0x1e   :  { %p1990_p13 = por %p1989_p12, %p1988_p11 }
  0x20   :  { %p1991_p0 = pnand %p1990_p13, %p1984_p10 }
  0x22   :  { %1994 = shalt.err (!%p1991_p0)
}
  0x23   :  { %29 = dma.hbm_to_vmem [thread:$0]  %s3131_s0, 2048, %s24_s18, [#allocation3], %s2087_s10, %s2087_s10, %s2088_s11  }
  0x24   :  { %s2003_s3 = scalar_lea.vmem %s48_s20, 256  ;;  %p2008_p2 = scmp.lt.s32.totalorder %s48_s20, %s48_s20 }
  0x25   :  { %p2004_p1 = scmp.ne.s32.totalorder %s48_s20, %s2003_s3  ;;  %p2009_p3 = scmp.lt.s32.totalorder %s2003_s3, %s2003_s3 }
  0x27   :  { %p2010_p4 = por %p2009_p3, %p2008_p2 }
  0x29   :  { %p2011_p5 = pnand %p2010_p4, %p2004_p1 }
  0x2b   :  { %2014 = shalt.err (!%p2011_p5)
}
  0x2c   :  { %53 = dma.hbm_to_vmem [thread:$0]  %s3133_s2, 256, %s48_s20, [#allocation6], %s2087_s10, %s2087_s10, %s2088_s11  }
  0x2d   :  { %s2091_s25 = smov [#allocation10]   ;;  %s2092_s27 = smov [#allocation11]  }
  0x2e   :  { %s71_s26 = sshll.u32 %s2091_s25, 4  ;;  %s83_s28 = sshll.u32 %s2092_s27, 4  ;;  %s72_s26 = int_to_ptr.vmem [resolvable:$true] %s71_s26  ;;  %s84_s28 = int_to_ptr.vmem [resolvable:$true] %s83_s28 }
  0x2f   :  { %s2023_s0 = scalar_lea.vmem %s72_s26, 1280  ;;  %p2028_p7 = scmp.lt.s32.totalorder %s72_s26, %s72_s26 }
  0x30   :  { %p2024_p6 = scmp.ne.s32.totalorder %s72_s26, %s2023_s0  ;;  %p2029_p8 = scmp.lt.s32.totalorder %s2023_s0, %s2023_s0 }
  0x32   :  { %p2030_p9 = por %p2029_p8, %p2028_p7 }
  0x34   :  { %p2031_p10 = pnand %p2030_p9, %p2024_p6 }
  0x36   :  { %2034 = shalt.err (!%p2031_p10)
}
  0x37   :  { %77 = dma.hbm_to_vmem [thread:$0]  %s3135_s4, 1280, %s72_s26, [#allocation9], %s2087_s10, %s2087_s10, %s2088_s11  }
  0x38   :  { %s2043_s2 = scalar_lea.vmem %s84_s28, 5120  ;;  %p2048_p12 = scmp.lt.s32.totalorder %s84_s28, %s84_s28 }
  0x39   :  { %p2044_p11 = scmp.ne.s32.totalorder %s84_s28, %s2043_s2  ;;  %p2049_p13 = scmp.lt.s32.totalorder %s2043_s2, %s2043_s2 }
  0x3b   :  { %p2050_p0 = por %p2049_p13, %p2048_p12 }
  0x3d   :  { %p2051_p1 = pnand %p2050_p0, %p2044_p11 }
  0x3f   :  { %2054 = shalt.err (!%p2051_p1)
}
  0x40   :  { %89 = dma.hbm_to_vmem [thread:$0]  %s3136_s5, 5120, %s84_s28, [#allocation12], %s2087_s10, %s2087_s10, %s2088_s11  }
  0x41   :  { %2075 = dma.done.wait [#allocation3], 2048  }
  0x42   :  { %2076 = vsyncadd [#allocation3], 4294965248 }
  0x43   :  { %2077 = dma.done.wait [#allocation6], 2304  }
  0x44   :  { %2078 = vsyncadd [#allocation6], 4294964992 }
  0x45   :  { %2079 = dma.done.wait [#allocation9], 2560  }
  0x46   :  { %2080 = vsyncadd [#allocation9], 4294964736 }
  0x47   :  { %2081 = dma.done.wait [#allocation12], 5120  }
  0x48   :  { %2082 = vsyncadd [#allocation12], 4294962176  ;;  %v1398_v0 = vld [vmem:[#allocation7] sm:$0xff]   ;;  %v1773_v1 = vld [vmem:[#allocation7 + $0x8] sm:$0xff]   ;;  %vm328_vm0 = vcmask 1041409   ;;  %vm331_vm1 = vcmask 1042434  }
  0x49   :  { %v1406_v2 = vld [vmem:[#allocation2] sm:$0xff]   ;;  %v2178_v3 = vunpack.c.l.bf16 %v1398_v0  ;;  %v2180_v4 = vunpack.c.h.bf16 %v1398_v0  ;;  %v2182_v5 = vunpack.c.l.bf16 %v1773_v1  ;;  %v2184_v6 = vunpack.c.h.bf16 %v1773_v1  ;;  %v1774_v7 = vld [vmem:[#allocation2 + $0x8] sm:$0xff]   ;;  %v1775_v8 = vld [vmem:[#allocation2 + $0x10] sm:$0xff]  }
  0x4a   :  { %v1776_v9 = vld [vmem:[#allocation2 + $0x18] sm:$0xff]   ;;  %v1407_v10 = vunpack.c.l.bf16 %v1406_v2  ;;  %v1408_v11 = vunpack.c.h.bf16 %v1406_v2  ;;  %v1411_v12 = vunpack.c.l.bf16 %v1774_v7  ;;  %v1412_v13 = vunpack.c.h.bf16 %v1774_v7  ;;  %v1777_v14 = vld [vmem:[#allocation2 + $0x20] sm:$0xff]   ;;  %v1778_v15 = vld [vmem:[#allocation2 + $0x28] sm:$0xff]  }
  0x4b   :  { %v1779_v16 = vld [vmem:[#allocation2 + $0x30] sm:$0xff]   ;;  %v1415_v17 = vunpack.c.l.bf16 %v1775_v8  ;;  %v1416_v18 = vunpack.c.h.bf16 %v1775_v8  ;;  %v1419_v19 = vunpack.c.l.bf16 %v1776_v9  ;;  %v1420_v20 = vunpack.c.h.bf16 %v1776_v9  ;;  %v1780_v21 = vld [vmem:[#allocation2 + $0x38] sm:$0xff]   ;;  %v1781_v22 = vld [vmem:[#allocation2 + $0x40] sm:$0xff]  }
  0x4c   :  { %v1782_v23 = vld [vmem:[#allocation2 + $0x48] sm:$0xff]   ;;  %v1423_v24 = vunpack.c.l.bf16 %v1777_v14  ;;  %v1424_v25 = vunpack.c.h.bf16 %v1777_v14  ;;  %v1427_v26 = vunpack.c.l.bf16 %v1778_v15  ;;  %v1428_v27 = vunpack.c.h.bf16 %v1778_v15  ;;  %v1783_v28 = vld [vmem:[#allocation2 + $0x50] sm:$0xff]   ;;  %v1784_v29 = vld [vmem:[#allocation2 + $0x58] sm:$0xff]  }
  0x4d   :  { %v1431_v30 = vunpack.c.l.bf16 %v1779_v16  ;;  %v1432_v31 = vunpack.c.h.bf16 %v1779_v16  ;;  %v1435_v32 = vunpack.c.l.bf16 %v1780_v21  ;;  %v1436_v33 = vunpack.c.h.bf16 %v1780_v21  ;;  %v1785_v34 = vld [vmem:[#allocation2 + $0x60] sm:$0xff]   ;;  %v1786_v35 = vld [vmem:[#allocation2 + $0x68] sm:$0xff]   ;;  %v1787_v40 = vld [vmem:[#allocation2 + $0x70] sm:$0xff]  }
  0x4e   :  { %v1439_v36 = vunpack.c.l.bf16 %v1781_v22  ;;  %v1440_v37 = vunpack.c.h.bf16 %v1781_v22  ;;  %v1443_v38 = vunpack.c.l.bf16 %v1782_v23  ;;  %v1444_v39 = vunpack.c.h.bf16 %v1782_v23  ;;  %v1788_v41 = vld [vmem:[#allocation2 + $0x78] sm:$0xff]  }
  0x4f   :  { %v1447_v42 = vunpack.c.l.bf16 %v1783_v28  ;;  %v1448_v43 = vunpack.c.h.bf16 %v1783_v28  ;;  %v1451_v44 = vunpack.c.l.bf16 %v1784_v29  ;;  %v1452_v45 = vunpack.c.h.bf16 %v1784_v29 }
  0x50   :  { %v1455_v46 = vunpack.c.l.bf16 %v1785_v34  ;;  %v1456_v47 = vunpack.c.h.bf16 %v1785_v34  ;;  %v1459_v48 = vunpack.c.l.bf16 %v1786_v35  ;;  %v1460_v49 = vunpack.c.h.bf16 %v1786_v35 }
  0x51   :  { %v1463_v50 = vunpack.c.l.bf16 %v1787_v40  ;;  %v1464_v51 = vunpack.c.h.bf16 %v1787_v40  ;;  %v1467_v52 = vunpack.c.l.bf16 %v1788_v41  ;;  %v1468_v53 = vunpack.c.h.bf16 %v1788_v41 }
  0x52   :  { %v184_v54 = vmul.f32 %v1407_v10, %v2178_v3  ;;  %v185_v55 = vmul.f32 %v1408_v11, %v2180_v4  ;;  %v186_v56 = vmul.f32 %v1411_v12, %v2182_v5  ;;  %v187_v57 = vmul.f32 %v1412_v13, %v2184_v6 }
  0x53   :  { %v188_v58 = vmul.f32 %v1415_v17, %v2178_v3  ;;  %v189_v59 = vmul.f32 %v1416_v18, %v2180_v4  ;;  %v190_v60 = vmul.f32 %v1419_v19, %v2182_v5  ;;  %v191_v61 = vmul.f32 %v1420_v20, %v2184_v6 }
  0x54   :  { %v192_v62 = vmul.f32 %v1423_v24, %v2178_v3  ;;  %v193_v63 = vmul.f32 %v1424_v25, %v2180_v4  ;;  %v194_v0 = vmul.f32 %v1427_v26, %v2182_v5  ;;  %v195_v1 = vmul.f32 %v1428_v27, %v2184_v6 }
  0x55   :  { %v196_v2 = vmul.f32 %v1431_v30, %v2178_v3  ;;  %v197_v7 = vmul.f32 %v1432_v31, %v2180_v4  ;;  %v198_v8 = vmul.f32 %v1435_v32, %v2182_v5  ;;  %v199_v9 = vmul.f32 %v1436_v33, %v2184_v6 }
  0x56   :  { %v200_v10 = vmul.f32 %v1439_v36, %v2178_v3  ;;  %v201_v11 = vmul.f32 %v1440_v37, %v2180_v4  ;;  %v202_v12 = vmul.f32 %v1443_v38, %v2182_v5  ;;  %v203_v13 = vmul.f32 %v1444_v39, %v2184_v6 }
  0x57   :  { %v204_v14 = vmul.f32 %v1447_v42, %v2178_v3  ;;  %v205_v15 = vmul.f32 %v1448_v43, %v2180_v4  ;;  %v206_v16 = vmul.f32 %v1451_v44, %v2182_v5  ;;  %v207_v17 = vmul.f32 %v1452_v45, %v2184_v6 }
  0x58   :  { %v208_v18 = vmul.f32 %v1455_v46, %v2178_v3  ;;  %v209_v19 = vmul.f32 %v1456_v47, %v2180_v4  ;;  %v210_v20 = vmul.f32 %v1459_v48, %v2182_v5  ;;  %v211_v21 = vmul.f32 %v1460_v49, %v2184_v6 }
  0x59   :  { %v212_v22 = vmul.f32 %v1463_v50, %v2178_v3  ;;  %v213_v23 = vmul.f32 %v1464_v51, %v2180_v4  ;;  %v214_v24 = vmul.f32 %v1467_v52, %v2182_v5  ;;  %v215_v25 = vmul.f32 %v1468_v53, %v2184_v6 }
  0x5a   :  { %v216_v26 = vadd.f32 %v185_v55, %v184_v54  ;;  %v225_v27 = vadd.f32 %v189_v59, %v188_v58  ;;  %v234_v28 = vadd.f32 %v193_v63, %v192_v62  ;;  %v243_v29 = vadd.f32 %v197_v7, %v196_v2 }
  0x5b   :  { %v252_v30 = vadd.f32 %v201_v11, %v200_v10  ;;  %v261_v31 = vadd.f32 %v205_v15, %v204_v14  ;;  %v270_v32 = vadd.f32 %v209_v19, %v208_v18  ;;  %v279_v33 = vadd.f32 %v213_v23, %v212_v22 }
  0x5c   :  { %v217_v34 = vadd.f32 %v216_v26, %v186_v56  ;;  %v226_v35 = vadd.f32 %v225_v27, %v190_v60  ;;  %v235_v36 = vadd.f32 %v234_v28, %v194_v0  ;;  %v244_v37 = vadd.f32 %v243_v29, %v198_v8 }
  0x5d   :  { %v253_v38 = vadd.f32 %v252_v30, %v202_v12  ;;  %v262_v39 = vadd.f32 %v261_v31, %v206_v16  ;;  %v271_v40 = vadd.f32 %v270_v32, %v210_v20  ;;  %v280_v41 = vadd.f32 %v279_v33, %v214_v24 }
  0x5e   :  { %v218_v42 = vadd.f32 %v217_v34, %v187_v57  ;;  %v227_v43 = vadd.f32 %v226_v35, %v191_v61  ;;  %v236_v44 = vadd.f32 %v235_v36, %v195_v1  ;;  %v245_v45 = vadd.f32 %v244_v37, %v199_v9 }
  0x5f   :  { %v254_v46 = vadd.f32 %v253_v38, %v203_v13  ;;  %v263_v47 = vadd.f32 %v262_v39, %v207_v17  ;;  %v272_v48 = vadd.f32 %v271_v40, %v211_v21  ;;  %v281_v49 = vadd.f32 %v280_v41, %v215_v25 }
  0x60   :  { %v219_v50 = vrot.slane %v218_v42, 4  ;;  %v228_v51 = vrot.slane %v227_v43, 4  ;;  %v237_v52 = vrot.slane %v236_v44, 4  ;;  %v246_v53 = vrot.slane %v245_v45, 4 }
  0x61   :  { %v255_v54 = vrot.slane %v254_v46, 4  ;;  %v264_v55 = vrot.slane %v263_v47, 4  ;;  %v273_v56 = vrot.slane %v272_v48, 4  ;;  %v282_v58 = vrot.slane %v281_v49, 4 }
  0x62   :  { %v220_v59 = vadd.f32 %v219_v50, %v218_v42  ;;  %v229_v60 = vadd.f32 %v228_v51, %v227_v43  ;;  %v238_v62 = vadd.f32 %v237_v52, %v236_v44  ;;  %v247_v63 = vadd.f32 %v246_v53, %v245_v45 }
  0x63   :  { %v256_v57 = vadd.f32 %v255_v54, %v254_v46  ;;  %v265_v61 = vadd.f32 %v264_v55, %v263_v47  ;;  %v274_v0 = vadd.f32 %v273_v56, %v272_v48  ;;  %v283_v1 = vadd.f32 %v282_v58, %v281_v49 }
  0x64   :  { %v221_v2 = vrot.slane %v220_v59, 2  ;;  %v230_v7 = vrot.slane %v229_v60, 2  ;;  %v239_v8 = vrot.slane %v238_v62, 2  ;;  %v248_v9 = vrot.slane %v247_v63, 2 }
  0x65   :  { %v257_v10 = vrot.slane %v256_v57, 2  ;;  %v266_v11 = vrot.slane %v265_v61, 2  ;;  %v275_v12 = vrot.slane %v274_v0, 2  ;;  %v284_v13 = vrot.slane %v283_v1, 2 }
  0x66   :  { %v222_v14 = vadd.f32 %v221_v2, %v220_v59  ;;  %v231_v15 = vadd.f32 %v230_v7, %v229_v60  ;;  %v240_v16 = vadd.f32 %v239_v8, %v238_v62  ;;  %v249_v17 = vadd.f32 %v248_v9, %v247_v63 }
  0x67   :  { %v258_v18 = vadd.f32 %v257_v10, %v256_v57  ;;  %v267_v19 = vadd.f32 %v266_v11, %v265_v61  ;;  %v276_v20 = vadd.f32 %v275_v12, %v274_v0  ;;  %v285_v21 = vadd.f32 %v284_v13, %v283_v1 }
  0x68   :  { %v223_v22 = vrot.slane %v222_v14, 1  ;;  %v232_v23 = vrot.slane %v231_v15, 1  ;;  %v241_v24 = vrot.slane %v240_v16, 1  ;;  %v250_v25 = vrot.slane %v249_v17, 1 }
  0x69   :  { %v259_v26 = vrot.slane %v258_v18, 1  ;;  %v268_v27 = vrot.slane %v267_v19, 1  ;;  %v277_v28 = vrot.slane %v276_v20, 1  ;;  %v286_v29 = vrot.slane %v285_v21, 1 }
  0x6a   :  { %v224_v30 = vadd.f32 %v223_v22, %v222_v14  ;;  %v233_v31 = vadd.f32 %v232_v23, %v231_v15  ;;  %v242_v32 = vadd.f32 %v241_v24, %v240_v16  ;;  %v251_v33 = vadd.f32 %v250_v25, %v249_v17 }
  0x6b   :  { %v260_v34 = vadd.f32 %v259_v26, %v258_v18  ;;  %v269_v35 = vadd.f32 %v268_v27, %v267_v19  ;;  %v278_v36 = vadd.f32 %v277_v28, %v276_v20  ;;  %v287_v37 = vadd.f32 %v286_v29, %v285_v21 }
  0x6c   :  { %vm334_vm2 = vcmask 1043459   ;;  %vm337_vm3 = vcmask 1044484   ;;  %vm340_vm4 = vcmask 1045509   ;;  %vm343_vm5 = vcmask 1046534  }
  0x6d   :  { %v288_v38 = vmax.f32 %v224_v30, %v260_v34  ;;  %v289_v39 = vmax.f32 %v233_v31, %v269_v35  ;;  %v290_v40 = vmax.f32 %v242_v32, %v278_v36  ;;  %v291_v41 = vmax.f32 %v251_v33, %v287_v37 }
  0x6e   :  { %vm346_vm6 = vcmask 1047559   ;;  %v355_v24 = vlaneseq  ;;  %vm812_vm7 = vcmask 261120   ;;  %vm666_vm8 = vcmask 1044480  }
  0x6f   :  { %v292_v42 = vmax.f32 %v288_v38, %v289_v39  ;;  %v293_v43 = vmax.f32 %v290_v40, %v291_v41  ;;  %v2263_v39 = vld [vmem:[#allocation5 + $0x28] sm:$0xff]   ;;  %v2265_v40 = vld [vmem:[#allocation5 + $0x30] sm:$0xff]  }
  0x70   :  { %v356_v27 = vshrl.u32 %v355_v24, 7 }
  0x71   :  { %v294_v44 = vmax.f32 %v292_v42, %v293_v43 }
  0x73   :  { %v295_v45 = vsub.f32 %v224_v30, %v294_v44  ;;  %v296_v46 = vsub.f32 %v233_v31, %v294_v44  ;;  %v297_v47 = vsub.f32 %v242_v32, %v294_v44  ;;  %v298_v48 = vsub.f32 %v251_v33, %v294_v44  ;;  %v2252_v33 = vld [vmem:[#allocation5] sm:$0xff]  }
  0x74   :  { %v299_v49 = vsub.f32 %v260_v34, %v294_v44  ;;  %v300_v50 = vsub.f32 %v269_v35, %v294_v44  ;;  %v301_v51 = vsub.f32 %v278_v36, %v294_v44  ;;  %v302_v55 = vsub.f32 %v287_v37, %v294_v44  ;;  %v2254_v34 = vld [vmem:[#allocation5 + $0x8] sm:$0xff]   ;;  %v2256_v35 = vld [vmem:[#allocation5 + $0x10] sm:$0xff]   ;;  %v2258_v36 = vld [vmem:[#allocation5 + $0x18] sm:$0xff]  }
  0x75   :  { %v303_v52 = vmul.f32 1.442695, %v295_v45  ;;  %v305_v53 = vmul.f32 1.442695, %v296_v46  ;;  %v307_v54 = vmul.f32 1.442695, %v297_v47  ;;  %v1471_v38 = vunpack.c.l.bf16 %v2252_v33 }
  0x76   :  { %v309_v56 = vmul.f32 1.442695, %v298_v48  ;;  %v311_v58 = vmul.f32 1.442695, %v299_v49  ;;  %v313_v59 = vmul.f32 1.442695, %v300_v50  ;;  %v1472_v41 = vunpack.c.h.bf16 %v2252_v33 }
  0x77   :  { %1905 = vpow2.f32 %v303_v52  ;;  %v315_v60 = vmul.f32 1.442695, %v301_v51  ;;  %v317_v62 = vmul.f32 1.442695, %v302_v55  ;;  %v2249_v30 = vsub.s32 0, %v356_v27  ;;  %v2260_v37 = vld [vmem:[#allocation5 + $0x20] sm:$0xff]  }
  0x78   :  { %1907 = vpow2.f32 %v305_v53  ;;  %v1475_v42 = vunpack.c.l.bf16 %v2254_v34  ;;  %v1476_v43 = vunpack.c.h.bf16 %v2254_v34  ;;  %v1479_v44 = vunpack.c.l.bf16 %v2256_v35  ;;  %v2271_v45 = vld [vmem:[#allocation5 + $0x38] sm:$0xff]   ;;  %v2273_v46 = vld [vmem:[#allocation5 + $0x40] sm:$0xff]   ;;  %v2279_v51 = vld [vmem:[#allocation5 + $0x48] sm:$0xff]  }
  0x79   :  { %1909 = vpow2.f32 %v307_v54  ;;  %v1480_v47 = vunpack.c.h.bf16 %v2256_v35  ;;  %v1483_v48 = vunpack.c.l.bf16 %v2258_v36  ;;  %v1484_v49 = vunpack.c.h.bf16 %v2258_v36  ;;  %v2281_v52 = vld [vmem:[#allocation5 + $0x50] sm:$0xff]  }
  0x7a   :  { %1911 = vpow2.f32 %v309_v56  ;;  %v1487_v50 = vunpack.c.l.bf16 %v2260_v37  ;;  %v1488_v53 = vunpack.c.h.bf16 %v2260_v37  ;;  %v1491_v54 = vunpack.c.l.bf16 %v2263_v39 }
  0x7b   :  { %1913 = vpow2.f32 %v311_v58  ;;  %v1492_v55 = vunpack.c.h.bf16 %v2263_v39  ;;  %v1495_v56 = vunpack.c.l.bf16 %v2265_v40  ;;  %v2287_v58 = vld [vmem:[#allocation5 + $0x58] sm:$0xff]  }
  0x7c   :  { %1915 = vpow2.f32 %v313_v59  ;;  %v1496_v59 = vunpack.c.h.bf16 %v2265_v40 }
  0x7d   :  { %1917 = vpow2.f32 %v315_v60  ;;  %v1499_v60 = vunpack.c.l.bf16 %v2271_v45 }
  0x7e   :  { %1919 = vpow2.f32 %v317_v62  ;;  %v1500_v62 = vunpack.c.h.bf16 %v2271_v45 }
  0x84   :  { %v2218_v63 = vpop.eup %1905 }
  0x85   :  { %v2220_v57 = vpop.eup %1907 }
  0x86   :  { %v2222_v61 = vpop.eup %1909  ;;  %v327_v0 = vrot.slane %v2220_v57, 7 }
  0x87   :  { %v2225_v1 = vpop.eup %1911  ;;  %v330_v2 = vrot.slane %v2222_v61, 6 }
  0x88   :  { %v2228_v7 = vpop.eup %1913  ;;  %v329_v8 = vsel %vm328_vm0, %v327_v0, %v2218_v63  ;;  %v333_v9 = vrot.slane %v2225_v1, 5  ;;  %v1503_v0 = vunpack.c.l.bf16 %v2273_v46 }
  0x89   :  { %v2233_v10 = vpop.eup %1915  ;;  %v332_v11 = vsel %vm331_vm1, %v330_v2, %v329_v8  ;;  %v336_v12 = vrot.slane %v2228_v7, 4  ;;  %v2293_v2 = vld [vmem:[#allocation5 + $0x60] sm:$0xff]  }
  0x8a   :  { %v2237_v13 = vpop.eup %1917  ;;  %v335_v14 = vsel %vm334_vm2, %v333_v9, %v332_v11  ;;  %v339_v15 = vrot.slane %v2233_v10, 3  ;;  %v1504_v9 = vunpack.c.h.bf16 %v2273_v46  ;;  %v1507_v11 = vunpack.c.l.bf16 %v2279_v51 }
  0x8b   :  { %v2241_v16 = vpop.eup %1919  ;;  %v338_v17 = vsel %vm337_vm3, %v336_v12, %v335_v14  ;;  %v342_v18 = vrot.slane %v2237_v13, 2  ;;  %v1508_v12 = vunpack.c.h.bf16 %v2279_v51  ;;  %v1511_v14 = vunpack.c.l.bf16 %v2281_v52 }
  0x8c   :  { %v341_v19 = vsel %vm340_vm4, %v339_v15, %v338_v17  ;;  %v345_v20 = vrot.slane %v2241_v16, 1  ;;  %v1519_v24 = vunpack.c.l.bf16 %v2293_v2 }
  0x8d   :  { %v344_v21 = vsel %vm343_vm5, %v342_v18, %v341_v19  ;;  %v1512_v18 = vunpack.c.h.bf16 %v2281_v52  ;;  %v1515_v19 = vunpack.c.l.bf16 %v2287_v58 }
  0x8e   :  { %v347_v22 = vsel %vm346_vm6, %v345_v20, %v344_v21  ;;  %v2303_v20 = vld [vmem:[#allocation5 + $0x68] sm:$0xff]   ;;  %v2305_v21 = vld [vmem:[#allocation5 + $0x70] sm:$0xff]  }
  0x8f   :  { %v349_v23 = vrot.slane %v347_v22, 4 }
  0x91   :  { %v350_v25 = vadd.f32 %v349_v23, %v347_v22  ;;  %v1516_v23 = vunpack.c.h.bf16 %v2287_v58  ;;  %v3140_v58 = vunpack.c.h.bf16 %v2293_v2  ;;  %v3143_v2 = vunpack.c.l.bf16 %v2305_v21 }
  0x93   :  { %v351_v26 = vrot.slane %v350_v25, 2 }
  0x95   :  { %v352_v28 = vadd.f32 %v351_v26, %v350_v25  ;;  %v2311_v26 = vld [vmem:[#allocation5 + $0x78] sm:$0xff]  }
  0x97   :  { %v353_v29 = vrot.slane %v352_v28, 1 }
  0x99   :  { %v354_v31 = vadd.f32 %v353_v29, %v352_v28  ;;  %v2317_v29 = vld [vmem:[#allocation8] sm:$0xff]  }
  0x9b   :  { %v358_v32 = vrot.slane %v354_v31, %v2249_v30 }
  0x9d   :  { %1921 = vrcp.f32 %v358_v32 }
  0xaa   :  { %v1922_v8 = vpop.eup %1921 }
  0xab   :  { %v360_v15 = vmul.f32 %v1922_v8, %v2218_v63  ;;  %v361_v17 = vmul.f32 %v1922_v8, %v2220_v57  ;;  %v362_v22 = vmul.f32 %v1922_v8, %v2222_v61  ;;  %v363_v63 = vmul.f32 %v1922_v8, %v2225_v1 }
  0xac   :  { %v364_v57 = vmul.f32 %v1922_v8, %v2228_v7  ;;  %v365_v27 = vmul.f32 %v1922_v8, %v2233_v10  ;;  %v366_v28 = vmul.f32 %v1922_v8, %v2237_v13  ;;  %v367_v13 = vmul.f32 %v1922_v8, %v2241_v16 }
  0xad   :  { %v435_v33 = vrot.slane %v360_v15, %v2249_v30  ;;  %v439_v10 = vrot.slane %v361_v17, %v2249_v30  ;;  %v443_v35 = vrot.slane %v362_v22, %v2249_v30  ;;  %v447_v39 = vrot.slane %v363_v63, %v2249_v30 }
  0xae   :  { %v451_v40 = vrot.slane %v364_v57, %v2249_v30  ;;  %v455_v45 = vrot.slane %v365_v27, %v2249_v30  ;;  %v459_v46 = vrot.slane %v366_v28, %v2249_v30  ;;  %v463_v36 = vrot.slane %v367_v13, %v2249_v30 }
  0xaf   :  { %v464_v51 = vmul.f32 %v1471_v38, %v435_v33  ;;  %v465_v15 = vmul.f32 %v1472_v41, %v435_v33  ;;  %v466_v7 = vmul.f32 %v1475_v42, %v435_v33  ;;  %v467_v17 = vmul.f32 %v1476_v43, %v435_v33  ;;  %v784_v41 = vld [vmem:[%s3137_s6] sm:$0xff] }
  0xb0   :  { %v468_v1 = vmul.f32 %v1479_v44, %v439_v10  ;;  %v469_v16 = vmul.f32 %v1480_v47, %v439_v10  ;;  %v470_v8 = vmul.f32 %v1483_v48, %v439_v10  ;;  %v471_v22 = vmul.f32 %v1484_v49, %v439_v10  ;;  %v2339_v48 = vld [vmem:[#allocation8 + $0x8] sm:$0xff]   ;;  %v786_v49 = vld [vmem:[%s3137_s6 + $0x10] sm:$0xff]  ;;  %1877 = vmatprep.mubr.msk.f32.mxu0 %vm812_vm7, %v784_v41 }
  0xb1   :  { %v472_v34 = vmul.f32 %v1487_v50, %v443_v35  ;;  %v473_v37 = vmul.f32 %v1488_v53, %v443_v35  ;;  %v474_v32 = vmul.f32 %v1491_v54, %v443_v35  ;;  %v475_v63 = vmul.f32 %v1492_v55, %v443_v35  ;;  %v788_v54 = vld [vmem:[%s3138_s7] sm:$0xff]  ;;  %1880 = vmatprep.mubr.msk.f32.mxu1 %vm812_vm7, %v786_v49 }
  0xb2   :  { %v476_v31 = vmul.f32 %v1495_v56, %v447_v39  ;;  %v477_v57 = vmul.f32 %v1496_v59, %v447_v39  ;;  %v478_v61 = vmul.f32 %v1499_v60, %v447_v39  ;;  %v479_v27 = vmul.f32 %v1500_v62, %v447_v39  ;;  %v1805_v39 = vld [vmem:[#allocation8 + $0x10] sm:$0xff]  }
  0xb3   :  { %v480_v25 = vmul.f32 %v1503_v0, %v451_v40  ;;  %v481_v28 = vmul.f32 %v1504_v9, %v451_v40  ;;  %v482_v38 = vmul.f32 %v1507_v11, %v451_v40  ;;  %v496_v42 = vadd.f32 %v468_v1, %v464_v51 }
  0xb4   :  { %v503_v43 = vadd.f32 %v469_v16, %v465_v15  ;;  %v510_v44 = vadd.f32 %v470_v8, %v466_v7  ;;  %v517_v47 = vadd.f32 %v471_v22, %v467_v17  ;;  %v483_v50 = vmul.f32 %v1508_v12, %v451_v40 }
  0xb5   :  { %v484_v53 = vmul.f32 %v1511_v14, %v455_v45  ;;  %v497_v55 = vadd.f32 %v496_v42, %v472_v34  ;;  %v485_v62 = vmul.f32 %v1512_v18, %v455_v45  ;;  %v486_v0 = vmul.f32 %v1515_v19, %v455_v45  ;;  %v790_v14 = vld [vmem:[%s3138_s7 + $0x10] sm:$0xff] }
  0xb6   :  { %v504_v56 = vadd.f32 %v503_v43, %v473_v37  ;;  %v511_v59 = vadd.f32 %v510_v44, %v474_v32  ;;  %v518_v60 = vadd.f32 %v517_v47, %v475_v63  ;;  %v487_v9 = vmul.f32 %v1516_v23, %v455_v45  ;;  %v1809_v44 = vld [vmem:[#allocation8 + $0x30] sm:$0xff]   ;;  %v1810_v47 = vld [vmem:[#allocation8 + $0x38] sm:$0xff]  }
  0xb7   :  { %v1539_v11 = vunpack.c.l.bf16 %v2339_v48  ;;  %v2093_v12 = vmov 0   ;;  %v498_v32 = vadd.f32 %v497_v55, %v476_v31  ;;  %v488_v19 = vmul.f32 %v1519_v24, %v459_v46  ;;  %v789_v31 = vld [vmem:[%s3138_s7 + $0x8] sm:$0xff] }
  0xb8   :  { %1903 = vset.pattern.permute.xlu0 %v2093_v12  ;;  %v505_v33 = vadd.f32 %v504_v56, %v477_v57  ;;  %v512_v52 = vadd.f32 %v511_v59, %v478_v61  ;;  %v519_v18 = vadd.f32 %v518_v60, %v479_v27  ;;  %v489_v23 = vmul.f32 %v3140_v58, %v459_v46  ;;  %v1806_v24 = vld [vmem:[#allocation8 + $0x18] sm:$0xff]   ;;  %v1807_v57 = vld [vmem:[#allocation8 + $0x20] sm:$0xff]   ;;  %v1808_v27 = vld [vmem:[#allocation8 + $0x28] sm:$0xff]  }
  0xb9   :  { %794 = vperm.xlu0 %1903, %v788_v54   ;;  %v3141_v34 = vunpack.c.l.bf16 %v2303_v20  ;;  %v3142_v7 = vunpack.c.h.bf16 %v2303_v20  ;;  %1904 = vset.pattern.permute.xlu1 %v2093_v12  ;;  %v499_v61 = vadd.f32 %v498_v32, %v480_v25  ;;  %v492_v40 = vmul.f32 %v3143_v2, %v463_v36  ;;  %v791_v25 = vld [vmem:[%s3138_s7 + $0x18] sm:$0xff] }
  0xba   :  { %v506_v13 = vadd.f32 %v505_v33, %v481_v28  ;;  %v513_v35 = vadd.f32 %v512_v52, %v482_v38  ;;  %v520_v37 = vadd.f32 %v519_v18, %v483_v50  ;;  %804 = vperm.xlu1 %1904, %v790_v14   ;;  %v3144_v45 = vunpack.c.h.bf16 %v2305_v21 }
  0xbb   :  { %v490_v1 = vmul.f32 %v3141_v34, %v459_v46  ;;  %v491_v10 = vmul.f32 %v3142_v7, %v459_v46  ;;  %v3145_v20 = vunpack.c.l.bf16 %v2311_v26  ;;  %v3146_v15 = vunpack.c.h.bf16 %v2311_v26 }
  0xbc   :  { %v493_v51 = vmul.f32 %v3144_v45, %v463_v36  ;;  %v500_v16 = vadd.f32 %v499_v61, %v484_v53  ;;  %v507_v8 = vadd.f32 %v506_v13, %v485_v62  ;;  %v514_v22 = vadd.f32 %v513_v35, %v486_v0  ;;  %v1811_v62 = vld [vmem:[#allocation8 + $0x40] sm:$0xff]   ;;  %v1812_v0 = vld [vmem:[#allocation8 + $0x48] sm:$0xff]  }
  0xbd   :  { %v494_v46 = vmul.f32 %v3145_v20, %v463_v36  ;;  %v495_v17 = vmul.f32 %v3146_v15, %v463_v36  ;;  %v521_v63 = vadd.f32 %v520_v37, %v487_v9  ;;  %799 = vperm.xlu0 %1903, %v789_v31   ;;  %v1540_v21 = vunpack.c.h.bf16 %v2339_v48 }
  0xbe   :  { %v1543_v28 = vunpack.c.l.bf16 %v1805_v39  ;;  %v1544_v38 = vunpack.c.h.bf16 %v1805_v39  ;;  %v1547_v41 = vunpack.c.l.bf16 %v1806_v24  ;;  %v501_v42 = vadd.f32 %v500_v16, %v488_v19  ;;  %809 = vperm.xlu1 %1904, %v791_v25  }
  0xbf   :  { %v508_v43 = vadd.f32 %v507_v8, %v489_v23  ;;  %v515_v26 = vadd.f32 %v514_v22, %v490_v1  ;;  %v522_v36 = vadd.f32 %v521_v63, %v491_v10  ;;  %v1548_v49 = vunpack.c.h.bf16 %v1806_v24 }
  0xc0   :  { %v1551_v50 = vunpack.c.l.bf16 %v1807_v57  ;;  %v1552_v53 = vunpack.c.h.bf16 %v1807_v57  ;;  %v1555_v54 = vunpack.c.l.bf16 %v1808_v27  ;;  %v502_v55 = vadd.f32 %v501_v42, %v492_v40 }
  0xc1   :  { %v509_v56 = vadd.f32 %v508_v43, %v493_v51  ;;  %v516_v59 = vadd.f32 %v515_v26, %v494_v46  ;;  %v523_v60 = vadd.f32 %v522_v36, %v495_v17  ;;  %v1556_v9 = vunpack.c.h.bf16 %v1808_v27 }
  0xc2   :  { %v1559_v12 = vunpack.c.l.bf16 %v1809_v44  ;;  %v1560_v14 = vunpack.c.h.bf16 %v1809_v44  ;;  %v1563_v32 = vunpack.c.l.bf16 %v1810_v47  ;;  %v2383_v33 = vadd.f32 %v2178_v3, %v502_v55 }
  0xc3   :  { %v2386_v52 = vadd.f32 %v2180_v4, %v509_v56  ;;  %v2389_v18 = vadd.f32 %v2182_v5, %v516_v59  ;;  %v2392_v19 = vadd.f32 %v2184_v6, %v523_v60  ;;  %v1564_v58 = vunpack.c.h.bf16 %v1810_v47 }
  0xc4   :  { %v1567_v23 = vunpack.c.l.bf16 %v1811_v62  ;;  %v1568_v34 = vunpack.c.h.bf16 %v1811_v62  ;;  %v1571_v1 = vunpack.c.l.bf16 %v1812_v0  ;;  %v1572_v7 = vunpack.c.h.bf16 %v1812_v0 }
  0xc5   :  { %v3147_v10 = vunpack.c.l.bf16 %v2317_v29  ;;  %v3148_v3 = vunpack.c.h.bf16 %v2317_v29  ;;  %v570_v5 = vmul.f32 %v1539_v11, %v2389_v18  ;;  %v571_v6 = vmul.f32 %v1540_v21, %v2392_v19 }
  0xc6   :  { %v572_v61 = vmul.f32 %v1543_v28, %v2383_v33  ;;  %v573_v13 = vmul.f32 %v1544_v38, %v2386_v52  ;;  %v574_v35 = vmul.f32 %v1547_v41, %v2389_v18  ;;  %v575_v37 = vmul.f32 %v1548_v49, %v2392_v19 }
  0xc7   :  { %v568_v31 = vmul.f32 %v3147_v10, %v2383_v33  ;;  %v569_v4 = vmul.f32 %v3148_v3, %v2386_v52  ;;  %v576_v39 = vmul.f32 %v1551_v50, %v2383_v33  ;;  %v577_v24 = vmul.f32 %v1552_v53, %v2386_v52 }
  0xc8   :  { %v578_v29 = vmul.f32 %v1555_v54, %v2389_v18  ;;  %v579_v2 = vmul.f32 %v1556_v9, %v2392_v19  ;;  %v580_v48 = vmul.f32 %v1559_v12, %v2383_v33  ;;  %v581_v11 = vmul.f32 %v1560_v14, %v2386_v52 }
  0xc9   :  { %v582_v40 = vmul.f32 %v1563_v32, %v2389_v18  ;;  %v583_v45 = vmul.f32 %v1564_v58, %v2392_v19  ;;  %v584_v51 = vmul.f32 %v1567_v23, %v2383_v33  ;;  %v585_v20 = vmul.f32 %v1568_v34, %v2386_v52 }
  0xca   :  { %v586_v46 = vmul.f32 %v1571_v1, %v2389_v18  ;;  %v588_v15 = vadd.f32 %v569_v4, %v568_v31  ;;  %v597_v17 = vadd.f32 %v573_v13, %v572_v61  ;;  %v606_v25 = vadd.f32 %v577_v24, %v576_v39 }
  0xcb   :  { %v615_v16 = vadd.f32 %v581_v11, %v580_v48  ;;  %v587_v8 = vmul.f32 %v1572_v7, %v2392_v19  ;;  %v624_v22 = vadd.f32 %v585_v20, %v584_v51 }
  0xcc   :  { %v589_v63 = vadd.f32 %v588_v15, %v570_v5  ;;  %v598_v57 = vadd.f32 %v597_v17, %v574_v35  ;;  %v607_v27 = vadd.f32 %v606_v25, %v578_v29 }
  0xcd   :  { %v616_v21 = vadd.f32 %v615_v16, %v582_v40  ;;  %v625_v28 = vadd.f32 %v624_v22, %v586_v46 }
  0xce   :  { %v590_v38 = vadd.f32 %v589_v63, %v571_v6  ;;  %v599_v41 = vadd.f32 %v598_v57, %v575_v37  ;;  %v608_v42 = vadd.f32 %v607_v27, %v579_v2 }
  0xcf   :  { %v617_v43 = vadd.f32 %v616_v21, %v583_v45  ;;  %v626_v26 = vadd.f32 %v625_v28, %v587_v8 }
  0xd0   :  { %v591_v36 = vrot.slane %v590_v38, 4  ;;  %v600_v44 = vrot.slane %v599_v41, 4  ;;  %v609_v47 = vrot.slane %v608_v42, 4 }
  0xd1   :  { %v618_v49 = vrot.slane %v617_v43, 4  ;;  %v627_v50 = vrot.slane %v626_v26, 4 }
  0xd2   :  { %v592_v53 = vadd.f32 %v591_v36, %v590_v38  ;;  %v601_v54 = vadd.f32 %v600_v44, %v599_v41  ;;  %v610_v55 = vadd.f32 %v609_v47, %v608_v42 }
  0xd3   :  { %v619_v56 = vadd.f32 %v618_v49, %v617_v43  ;;  %v628_v59 = vadd.f32 %v627_v50, %v626_v26 }
  0xd4   :  { %v593_v60 = vrot.slane %v592_v53, 2  ;;  %v602_v62 = vrot.slane %v601_v54, 2  ;;  %v611_v0 = vrot.slane %v610_v55, 2 }
  0xd5   :  { %v620_v9 = vrot.slane %v619_v56, 2  ;;  %v629_v12 = vrot.slane %v628_v59, 2 }
  0xd6   :  { %v594_v14 = vadd.f32 %v593_v60, %v592_v53  ;;  %v603_v32 = vadd.f32 %v602_v62, %v601_v54  ;;  %v612_v58 = vadd.f32 %v611_v0, %v610_v55  ;;  %v1813_v54 = vld [vmem:[#allocation10 + $0x8] sm:$0xff]   ;;  %v1815_v55 = vld [vmem:[#allocation10 + $0x18] sm:$0xff]   ;;  %v1574_v62 = vld [vmem:[#allocation10] sm:$0xff]  }
  0xd7   :  { %v621_v23 = vadd.f32 %v620_v9, %v619_v56  ;;  %v630_v34 = vadd.f32 %v629_v12, %v628_v59  ;;  %v1817_v56 = vld [vmem:[#allocation10 + $0x28] sm:$0xff]   ;;  %v1819_v59 = vld [vmem:[#allocation10 + $0x38] sm:$0xff]   ;;  %v1814_v0 = vld [vmem:[#allocation10 + $0x10] sm:$0xff]   ;;  %v1580_v12 = vunpack.c.h.bf16 %v1813_v54 }
  0xd8   :  { %v595_v1 = vrot.slane %v594_v14, 1  ;;  %v604_v7 = vrot.slane %v603_v32, 1  ;;  %v613_v10 = vrot.slane %v612_v58, 1  ;;  %v1821_v60 = vld [vmem:[#allocation10 + $0x48] sm:$0xff]   ;;  %v1816_v9 = vld [vmem:[#allocation10 + $0x20] sm:$0xff]  }
  0xd9   :  { %v622_v31 = vrot.slane %v621_v23, 1  ;;  %v631_v3 = vrot.slane %v630_v34, 1 }
  0xda   :  { %v596_v4 = vadd.f32 %v595_v1, %v594_v14  ;;  %v614_v5 = vadd.f32 %v613_v10, %v612_v58  ;;  %v605_v61 = vadd.f32 %v604_v7, %v603_v32  ;;  %v1588_v14 = vunpack.c.h.bf16 %v1815_v55 }
  0xdb   :  { %v623_v6 = vadd.f32 %v622_v31, %v621_v23  ;;  %v632_v13 = vadd.f32 %v631_v3, %v630_v34  ;;  %v1596_v32 = vunpack.c.h.bf16 %v1817_v56  ;;  %v1604_v58 = vunpack.c.h.bf16 %v1819_v59 }
  0xdc   :  { %v1612_v23 = vunpack.c.h.bf16 %v1821_v60  ;;  %v1579_v34 = vunpack.c.l.bf16 %v1813_v54  ;;  %v1587_v1 = vunpack.c.l.bf16 %v1815_v55  ;;  %v1595_v7 = vunpack.c.l.bf16 %v1817_v56 }
  0xdd   :  { %v633_v35 = vmax.f32 %v596_v4, %v632_v13  ;;  %v635_v37 = vmax.f32 %v614_v5, %v623_v6  ;;  %v1603_v31 = vunpack.c.l.bf16 %v1819_v59  ;;  %v1576_v3 = vunpack.c.h.bf16 %v1574_v62 }
  0xdf   :  { %v634_v39 = vmax.f32 %v633_v35, %v605_v61 }
  0xe1   :  { %v636_v24 = vmax.f32 %v634_v39, %v635_v37  ;;  %v1818_v37 = vld [vmem:[#allocation10 + $0x30] sm:$0xff]   ;;  %v1820_v39 = vld [vmem:[#allocation10 + $0x40] sm:$0xff]  }
  0xe3   :  { %v637_v29 = vsub.f32 %v596_v4, %v636_v24  ;;  %v638_v2 = vsub.f32 %v605_v61, %v636_v24  ;;  %v639_v48 = vsub.f32 %v614_v5, %v636_v24  ;;  %v640_v11 = vsub.f32 %v623_v6, %v636_v24 }
  0xe4   :  { %v641_v40 = vsub.f32 %v632_v13, %v636_v24  ;;  %v1584_v4 = vunpack.c.h.bf16 %v1814_v0  ;;  %v1592_v5 = vunpack.c.h.bf16 %v1816_v9 }
  0xe5   :  { %v642_v45 = vmul.f32 1.442695, %v637_v29  ;;  %v644_v51 = vmul.f32 1.442695, %v638_v2  ;;  %v646_v20 = vmul.f32 1.442695, %v639_v48  ;;  %v1611_v29 = vunpack.c.l.bf16 %v1821_v60 }
  0xe6   :  { %v648_v46 = vmul.f32 1.442695, %v640_v11  ;;  %v650_v15 = vmul.f32 1.442695, %v641_v40  ;;  %v1575_v2 = vunpack.c.l.bf16 %v1574_v62  ;;  %v1583_v48 = vunpack.c.l.bf16 %v1814_v0 }
  0xe7   :  { %1923 = vpow2.f32 %v642_v45 }
  0xe8   :  { %1925 = vpow2.f32 %v644_v51 }
  0xe9   :  { %1927 = vpow2.f32 %v646_v20 }
  0xea   :  { %1929 = vpow2.f32 %v648_v46  ;;  %v1600_v46 = vunpack.c.h.bf16 %v1818_v37 }
  0xeb   :  { %1931 = vpow2.f32 %v650_v15  ;;  %v1608_v15 = vunpack.c.h.bf16 %v1820_v39 }
  0xf4   :  { %v1924_v17 = vpop.eup %1923 }
  0xf5   :  { %v1926_v25 = vpop.eup %1925 }
  0xf6   :  { %v1928_v16 = vpop.eup %1927  ;;  %v657_v8 = vrot.slane %v1926_v25, 7 }
  0xf7   :  { %v1930_v22 = vpop.eup %1929  ;;  %v659_v63 = vrot.slane %v1928_v16, 6 }
  0xf8   :  { %v1932_v57 = vpop.eup %1931  ;;  %v658_v27 = vsel %vm328_vm0, %v657_v8, %v1924_v17  ;;  %v661_v21 = vrot.slane %v1930_v22, 5 }
  0xf9   :  { %v660_v28 = vsel %vm331_vm1, %v659_v63, %v658_v27  ;;  %v663_v38 = vrot.slane %v1932_v57, 4 }
  0xfa   :  { %v662_v41 = vsel %vm334_vm2, %v661_v21, %v660_v28  ;;  %v1607_v21 = vunpack.c.l.bf16 %v1820_v39 }
  0xfb   :  { %v664_v42 = vsel %vm337_vm3, %v663_v38, %v662_v41 }
  0xfc   :  { %v667_v43 = vsel %vm666_vm8, %v664_v42, 0.0 }
  0xfd   :  { %v668_v26 = vrot.slane %v667_v43, 4 }
  0xff   :  { %v669_v36 = vadd.f32 %v668_v26, %v667_v43 }
 0x101   :  { %v670_v44 = vrot.slane %v669_v36, 2 }
 0x103   :  { %v671_v47 = vadd.f32 %v670_v44, %v669_v36 }
 0x105   :  { %v672_v49 = vrot.slane %v671_v47, 1 }
 0x107   :  { %v673_v50 = vadd.f32 %v672_v49, %v671_v47 }
 0x109   :  { %v677_v53 = vrot.slane %v673_v50, %v2249_v30 }
 0x10b   :  { %1933 = vrcp.f32 %v677_v53 }
 0x118   :  { %v1934_v10 = vpop.eup %1933 }
 0x119   :  { %v679_v6 = vmul.f32 %v1934_v10, %v1924_v17  ;;  %v680_v61 = vmul.f32 %v1934_v10, %v1926_v25  ;;  %v681_v13 = vmul.f32 %v1934_v10, %v1928_v16  ;;  %v682_v35 = vmul.f32 %v1934_v10, %v1930_v22 }
 0x11a   :  { %v683_v24 = vmul.f32 %v1934_v10, %v1932_v57  ;;  %v1591_v17 = vunpack.c.l.bf16 %v1816_v9  ;;  %v1599_v22 = vunpack.c.l.bf16 %v1818_v37  ;;  %v2454_v37 = vld [vmem:[#allocation11 + $0x8] sm:$0xff]  }
 0x11b   :  { %v727_v11 = vrot.slane %v679_v6, %v2249_v30  ;;  %v731_v40 = vrot.slane %v680_v61, %v2249_v30  ;;  %v735_v45 = vrot.slane %v681_v13, %v2249_v30  ;;  %v739_v51 = vrot.slane %v682_v35, %v2249_v30  ;;  %v2446_v6 = vld [vmem:[#allocation11 + $0x20] sm:$0xff]   ;;  %v2448_v61 = vld [vmem:[#allocation11 + $0x30] sm:$0xff]  }
 0x11c   :  { %v743_v20 = vrot.slane %v683_v24, %v2249_v30  ;;  %v2450_v13 = vld [vmem:[#allocation11 + $0x40] sm:$0xff]   ;;  %v2452_v35 = vld [vmem:[#allocation11 + $0x50] sm:$0xff]  }
 0x11d   :  { %v747_v25 = vmul.f32 %v1580_v12, %v727_v11  ;;  %v751_v16 = vmul.f32 %v1588_v14, %v731_v40  ;;  %v755_v8 = vmul.f32 %v1596_v32, %v735_v45  ;;  %v746_v63 = vmul.f32 %v1579_v34, %v727_v11 }
 0x11e   :  { %v750_v57 = vmul.f32 %v1587_v1, %v731_v40  ;;  %v754_v27 = vmul.f32 %v1595_v7, %v735_v45  ;;  %v759_v28 = vmul.f32 %v1604_v58, %v739_v51  ;;  %v763_v38 = vmul.f32 %v1612_v23, %v743_v20 }
 0x11f   :  { %v776_v41 = vadd.f32 %v751_v16, %v747_v25  ;;  %v745_v42 = vmul.f32 %v1576_v3, %v727_v11  ;;  %v758_v43 = vmul.f32 %v1603_v31, %v739_v51  ;;  %v749_v36 = vmul.f32 %v1584_v4, %v731_v40  ;;  %v2472_v25 = vld [vmem:[#allocation11 + $0x48] sm:$0xff]  }
 0x120   :  { %v772_v26 = vadd.f32 %v750_v57, %v746_v63  ;;  %v753_v44 = vmul.f32 %v1592_v5, %v735_v45  ;;  %v762_v47 = vmul.f32 %v1611_v29, %v743_v20  ;;  %v744_v49 = vmul.f32 %v1575_v2, %v727_v11  ;;  %v2458_v29 = vld [vmem:[#allocation11 + $0x18] sm:$0xff]   ;;  %v2460_v2 = vld [vmem:[#allocation11 + $0x28] sm:$0xff]   ;;  %v2590_v11 = vld [vmem:[#allocation11 + $0x130] sm:$0xff]  }
 0x121   :  { %v777_v30 = vadd.f32 %v776_v41, %v755_v8  ;;  %v748_v50 = vmul.f32 %v1583_v48, %v731_v40  ;;  %v757_v54 = vmul.f32 %v1600_v46, %v739_v51  ;;  %v768_v55 = vadd.f32 %v749_v36, %v745_v42  ;;  %v2464_v40 = vld [vmem:[#allocation11 + $0x38] sm:$0xff]   ;;  %v2486_v42 = vld [vmem:[#allocation11 + $0x68] sm:$0xff]  }
 0x122   :  { %v773_v53 = vadd.f32 %v772_v26, %v754_v27  ;;  %v752_v56 = vmul.f32 %v1591_v17, %v735_v45  ;;  %v756_v60 = vmul.f32 %v1599_v22, %v739_v51  ;;  %v761_v9 = vmul.f32 %v1608_v15, %v743_v20  ;;  %v2478_v57 = vld [vmem:[#allocation11 + $0x58] sm:$0xff]   ;;  %v2480_v27 = vld [vmem:[#allocation11 + $0x60] sm:$0xff]  }
 0x123   :  { %v778_v59 = vadd.f32 %v777_v30, %v759_v28  ;;  %v764_v62 = vadd.f32 %v748_v50, %v744_v49  ;;  %v769_v12 = vadd.f32 %v768_v55, %v753_v44  ;;  %v760_v32 = vmul.f32 %v1607_v21, %v743_v20  ;;  %v2496_v49 = vld [vmem:[#allocation11 + $0x80] sm:$0xff]   ;;  %v2560_v50 = vld [vmem:[#allocation11 + $0xf8] sm:$0xff]   ;;  %v2568_v30 = vld [vmem:[#allocation11 + $0x108] sm:$0xff]  }
 0x124   :  { %v774_v0 = vadd.f32 %v773_v53, %v758_v43  ;;  %v1632_v48 = vunpack.c.h.bf16 %v2446_v6  ;;  %v1620_v15 = vunpack.c.h.bf16 %v2454_v37  ;;  %v1628_v8 = vunpack.c.h.bf16 %v2458_v29  ;;  %v2488_v43 = vld [vmem:[#allocation11 + $0x70] sm:$0xff]   ;;  %v2576_v36 = vld [vmem:[#allocation11 + $0x118] sm:$0xff]  }
 0x125   :  { %v779_v14 = vadd.f32 %v778_v59, %v763_v38  ;;  %v765_v58 = vadd.f32 %v764_v62, %v752_v56  ;;  %v770_v34 = vadd.f32 %v769_v12, %v757_v54  ;;  %v1636_v21 = vunpack.c.h.bf16 %v2460_v2  ;;  %v2502_v56 = vld [vmem:[#allocation11 + $0x88] sm:$0xff]   ;;  %v2504_v59 = vld [vmem:[#allocation11 + $0x90] sm:$0xff]   ;;  %v2510_v12 = vld [vmem:[#allocation11 + $0x98] sm:$0xff]  }
 0x126   :  { %v775_v23 = vadd.f32 %v774_v0, %v762_v47  ;;  %v2494_v47 = vld [vmem:[#allocation11 + $0x78] sm:$0xff]   ;;  %v2552_v54 = vld [vmem:[#allocation11 + $0xe8] sm:$0xff]   ;;  %v2570_v0 = vld [vmem:[#allocation11 + $0x110] sm:$0xff]   ;;  %v3153_v63 = vunpack.c.l.bf16 %v2458_v29  ;;  %v3157_v29 = vunpack.c.h.bf16 %v2448_v61  ;;  %v3161_v26 = vunpack.c.l.bf16 %v2450_v13 }
 0x127   :  { %v783_v1 = vadd.f32 %v779_v14, %v2392_v19  ;;  %v766_v7 = vadd.f32 %v765_v58, %v756_v60  ;;  %v771_v31 = vadd.f32 %v770_v34, %v761_v9  ;;  %v787_v19 = vld [vmem:[%s3137_s6 + $0x18] sm:$0xff]  ;;  %v2512_v14 = vld [vmem:[#allocation11 + $0xa0] sm:$0xff]   ;;  %v2544_v34 = vld [vmem:[#allocation11 + $0xd8] sm:$0xff]   ;;  %v3163_v45 = vunpack.c.l.bf16 %v2472_v25 }
 0x128   :  { %v782_v10 = vadd.f32 %v775_v23, %v2389_v18  ;;  %v785_v18 = vld [vmem:[%s3137_s6 + $0x8] sm:$0xff]  ;;  %v2546_v23 = vld [vmem:[#allocation11 + $0xe0] sm:$0xff]   ;;  %v2584_v9 = vld [vmem:[#allocation11 + $0x128] sm:$0xff]   ;;  %v3166_v46 = vunpack.c.l.bf16 %v2452_v35  ;;  %v3168_v41 = vunpack.c.l.bf16 %v2478_v57  ;;  %v3171_v38 = vunpack.c.l.bf16 %v2480_v27  ;;  %s2094_s6 = smov [#allocation13]  }
 0x129   :  { %1869 = vmatprep.subr.mxu0 %v783_v1  ;;  %1883 = vmatprep.subr.mxu1 %v783_v1  ;;  %v767_v3 = vadd.f32 %v766_v7, %v760_v32  ;;  %v781_v4 = vadd.f32 %v771_v31, %v2386_v52  ;;  %v2444_v52 = vld [vmem:[#allocation11 + $0x10] sm:$0xff]   ;;  %v2536_v32 = vld [vmem:[#allocation11 + $0xc8] sm:$0xff]   ;;  %v2562_v58 = vld [vmem:[#allocation11 + $0x100] sm:$0xff]   ;;  %v3173_v62 = vunpack.c.l.bf16 %v2486_v42  ;;  %s1378_s3 = sshll.u32 %s2094_s6, 4  ;;  %s1379_s3 = int_to_ptr.vmem [resolvable:$true] %s1378_s3 }
 0x12a   :  { %1870 = vmatpush3.msra.mxu0 %v783_v1  ;;  %1887 = vmatpush3.msra.mxu1 %v783_v1  ;;  %v1624_v24 = vunpack.c.h.bf16 %v2444_v52  ;;  %v2518_v1 = vld [vmem:[#allocation11 + $0xa8] sm:$0xff]   ;;  %v2520_v7 = vld [vmem:[#allocation11 + $0xb0] sm:$0xff]   ;;  %v2578_v60 = vld [vmem:[#allocation11 + $0x120] sm:$0xff]   ;;  %s2055_s23 = scalar_lea.vmem %s1379_s3, 384  ;;  %p2060_p3 = scmp.lt.s32.totalorder %s1379_s3, %s1379_s3 }
 0x12b   :  { %1871 = vmatprep.subr.mxu0 %v782_v10  ;;  %1884 = vmatprep.subr.mxu1 %v782_v10  ;;  %v780_v5 = vadd.f32 %v767_v3, %v2383_v33  ;;  %v2442_v33 = vld [vmem:[#allocation11] sm:$0xff]   ;;  %v2538_v31 = vld [vmem:[#allocation11 + $0xd0] sm:$0xff]   ;;  %p2056_p2 = scmp.ne.s32.totalorder %s1379_s3, %s2055_s23  ;;  %p2061_p4 = scmp.lt.s32.totalorder %s2055_s23, %s2055_s23 }
 0x12c   :  { %1872 = vmatpush3.msra.mxu0 %v782_v10  ;;  %1888 = vmatpush3.msra.mxu1 %v782_v10  ;;  %v1616_v39 = vunpack.c.h.bf16 %v2442_v33  ;;  %v2592_v10 = vld [vmem:[#allocation11 + $0x138] sm:$0xff]  }
 0x12d   :  { %1873 = vmatprep.subr.mxu0 %v781_v4  ;;  %1885 = vmatprep.subr.mxu1 %v781_v4  ;;  %p2062_p5 = por %p2061_p4, %p2060_p3 }
 0x12e   :  { %1874 = vmatpush3.msra.mxu0 %v781_v4  ;;  %1889 = vmatpush3.msra.mxu1 %v781_v4  ;;  %v2554_v4 = vld [vmem:[#allocation11 + $0xf0] sm:$0xff]  }
 0x12f   :  { %1875 = vmatprep.subr.mxu0 %v780_v5  ;;  %1886 = vmatprep.subr.mxu1 %v780_v5  ;;  %p2063_p6 = pnand %p2062_p5, %p2056_p2 }
 0x130   :  { %1876 = vmatpush3.msra.mxu0 %v780_v5  ;;  %1890 = vmatpush3.msra.mxu1 %v780_v5  ;;  %v2526_v5 = vld [vmem:[#allocation11 + $0xb8] sm:$0xff]  }
 0x131   :  { %1878 = vmatmul.mubr.msk.f32.vlgmr.msra.gmra.mxu0 %vm812_vm7, %v785_v18  ;;  %1881 = vmatmul.mubr.msk.f32.vlgmr.msra.gmra.mxu1 %vm812_vm7, %v787_v19  ;;  %v2528_v18 = vld [vmem:[#allocation11 + $0xc0] sm:$0xff]  }
 0x134   :  { %v795_v3 = vpop.permute.xlu0 %794 }
 0x135   :  { %v2530_v19 = vpop.permute.xlu1 %804 }
 0x138   :  { %v800_v53 = vpop.permute.xlu0 %799 }
 0x139   :  { %v810_v55 = vpop.permute.xlu1 %809 }
 0x1f1   :  { %v1879_v51 = vpop.f32.mrf.mxu0  ;;  %v1882_v28 = vpop.f32.mrf.mxu1 }
 0x1f2   :  { %v2598_v22 = vadd.f32 %v1879_v51, %v800_v53  ;;  %v2600_v44 = vadd.f32 %v1882_v28, %v810_v55 }
 0x1f3   :  { %v891_v16 = vpop.f32.mrf.mxu0  ;;  %v901_v17 = vpop.f32.mrf.mxu1 }
 0x1f4   :  { %v2608_v20 = vadd.f32 %v891_v16, %v795_v3  ;;  %v2611_v51 = vadd.f32 %v901_v17, %v2530_v19  ;;  %v2616_v28 = vmul.f32 %v1616_v39, %v2598_v22  ;;  %v2621_v53 = vmul.f32 %v1620_v15, %v2600_v44 }
 0x1f5   :  { %v2626_v55 = vmul.f32 %v1624_v24, %v2598_v22  ;;  %v2631_v17 = vmul.f32 %v1628_v8, %v2600_v44  ;;  %v2636_v39 = vmul.f32 %v1632_v48, %v2598_v22  ;;  %v2641_v15 = vmul.f32 %v1636_v21, %v2600_v44 }
 0x1f6   :  { %v3150_v16 = vunpack.c.l.bf16 %v2442_v33  ;;  %v3151_v3 = vunpack.c.l.bf16 %v2454_v37  ;;  %v3152_v19 = vunpack.c.l.bf16 %v2444_v52  ;;  %v2661_v21 = vmul.f32 %v3153_v63, %v2611_v51 }
 0x1f7   :  { %3149 = vst [vmem:[#allocation19_spill] sm:$0xff] %v2641_v15  ;;  %v3154_v33 = vunpack.c.l.bf16 %v2446_v6  ;;  %v3155_v37 = vunpack.c.l.bf16 %v2460_v2  ;;  %v3156_v52 = vunpack.c.l.bf16 %v2448_v61  ;;  %v2681_v63 = vmul.f32 %v3157_v29, %v2598_v22 }
 0x1f8   :  { %v2646_v24 = vmul.f32 %v3150_v16, %v2608_v20  ;;  %v2651_v8 = vmul.f32 %v3151_v3, %v2611_v51  ;;  %v2656_v48 = vmul.f32 %v3152_v19, %v2608_v20  ;;  %v3158_v6 = vunpack.c.l.bf16 %v2464_v40 }
 0x1f9   :  { %v2666_v16 = vmul.f32 %v3154_v33, %v2608_v20  ;;  %v2671_v3 = vmul.f32 %v3155_v37, %v2611_v51  ;;  %v2676_v19 = vmul.f32 %v3156_v52, %v2608_v20  ;;  %v3159_v2 = vunpack.c.h.bf16 %v2464_v40 }
 0x1fa   :  { %v2686_v33 = vmul.f32 %v3158_v6, %v2611_v51  ;;  %v2696_v52 = vmul.f32 %v3161_v26, %v2608_v20  ;;  %v3162_v61 = vunpack.c.h.bf16 %v2450_v13  ;;  %v2706_v6 = vmul.f32 %v3163_v45, %v2611_v51 }
 0x1fb   :  { %v2691_v37 = vmul.f32 %v3159_v2, %v2600_v44  ;;  %v3164_v40 = vunpack.c.h.bf16 %v2472_v25  ;;  %v2716_v26 = vmul.f32 %v3166_v46, %v2608_v20  ;;  %v3167_v13 = vunpack.c.h.bf16 %v2452_v35 }
 0x1fc   :  { %v2701_v29 = vmul.f32 %v3162_v61, %v2598_v22  ;;  %v2726_v45 = vmul.f32 %v3168_v41, %v2611_v51  ;;  %v3169_v25 = vunpack.c.h.bf16 %v2478_v57  ;;  %v2736_v46 = vmul.f32 %v3171_v38, %v2608_v20 }
 0x1fd   :  { %3160 = vst [vmem:[#allocation20_spill] sm:$0xff] %v2691_v37  ;;  %v2711_v2 = vmul.f32 %v3164_v40, %v2600_v44  ;;  %v2721_v61 = vmul.f32 %v3167_v13, %v2598_v22  ;;  %v3172_v35 = vunpack.c.h.bf16 %v2480_v27  ;;  %v2746_v41 = vmul.f32 %v3173_v62, %v2611_v51 }
 0x1fe   :  { %v2731_v40 = vmul.f32 %v3169_v25, %v2600_v44  ;;  %v3174_v57 = vunpack.c.h.bf16 %v2486_v42  ;;  %v3178_v62 = vunpack.c.h.bf16 %v2494_v47  ;;  %v3180_v42 = vunpack.c.l.bf16 %v2496_v49 }
 0x1ff   :  { %3165 = vst [vmem:[#allocation21_spill] sm:$0xff] %v2711_v2  ;;  %v2741_v13 = vmul.f32 %v3172_v35, %v2598_v22  ;;  %v3176_v2 = vunpack.c.h.bf16 %v2488_v43  ;;  %v3177_v35 = vunpack.c.l.bf16 %v2494_v47  ;;  %v3185_v47 = vunpack.c.h.bf16 %v2502_v56 }
 0x200   :  { %3170 = vst [vmem:[#allocation22_spill] sm:$0xff] %v2731_v40  ;;  %v2751_v25 = vmul.f32 %v3174_v57, %v2600_v44  ;;  %v3175_v40 = vunpack.c.l.bf16 %v2488_v43  ;;  %v2767_v15 = vmul.f32 %v3178_v62, %v2600_v44  ;;  %v2772_v57 = vmul.f32 %v3180_v42, %v2608_v20 }
 0x201   :  { %v1099_v27 = vmul.f32 %v3176_v2, %v2598_v22  ;;  %v2762_v37 = vmul.f32 %v3177_v35, %v2611_v51  ;;  %v3183_v2 = vunpack.c.l.bf16 %v2502_v56  ;;  %v2787_v62 = vmul.f32 %v3185_v47, %v2600_v44 }
 0x202   :  { %v1098_v38 = vmul.f32 %v3175_v40, %v2608_v20  ;;  %3179 = vst [vmem:[#allocation23_spill] sm:$0xff] %v2767_v15  ;;  %v3181_v40 = vunpack.c.h.bf16 %v2496_v49  ;;  %v3187_v15 = vunpack.c.l.bf16 %v2504_v59  ;;  %v3188_v49 = vunpack.c.h.bf16 %v2504_v59 }
 0x203   :  { %v2782_v35 = vmul.f32 %v3183_v2, %v2611_v51  ;;  %3186 = vst [vmem:[#allocation26_spill] sm:$0xff] %v2787_v62  ;;  %v3191_v56 = vunpack.c.h.bf16 %v2510_v12  ;;  %v3193_v62 = vunpack.c.l.bf16 %v2512_v14  ;;  %v3194_v59 = vunpack.c.h.bf16 %v2512_v14 }
 0x204   :  { %v2777_v43 = vmul.f32 %v3181_v40, %v2598_v22  ;;  %v2792_v42 = vmul.f32 %v3187_v15, %v2608_v20  ;;  %v2797_v40 = vmul.f32 %v3188_v49, %v2598_v22  ;;  %v3200_v14 = vunpack.c.h.bf16 %v2520_v7 }
 0x205   :  { %3184 = vst [vmem:[#allocation25_spill] sm:$0xff] %v2782_v35  ;;  %v2807_v47 = vmul.f32 %v3191_v56, %v2600_v44  ;;  %v2812_v15 = vmul.f32 %v3193_v62, %v2608_v20  ;;  %v2817_v49 = vmul.f32 %v3194_v59, %v2598_v22  ;;  %v3195_v35 = vunpack.c.l.bf16 %v2518_v1 }
 0x206   :  { %3182 = vst [vmem:[#allocation24_spill] sm:$0xff] %v2777_v43  ;;  %v3189_v43 = vunpack.c.l.bf16 %v2510_v12  ;;  %v3197_v12 = vunpack.c.h.bf16 %v2518_v1  ;;  %v2837_v59 = vmul.f32 %v3200_v14, %v2598_v22  ;;  %v3203_v1 = vunpack.c.h.bf16 %v2526_v5 }
 0x207   :  { %3192 = vst [vmem:[#allocation28_spill] sm:$0xff] %v2807_v47  ;;  %v3199_v47 = vunpack.c.l.bf16 %v2520_v7  ;;  %v3206_v7 = vunpack.c.h.bf16 %v2528_v18 }
 0x208   :  { %v2802_v2 = vmul.f32 %v3189_v43, %v2611_v51  ;;  %v2822_v43 = vmul.f32 %v3195_v35, %v2611_v51  ;;  %v2827_v56 = vmul.f32 %v3197_v12, %v2600_v44  ;;  %v2847_v12 = vmul.f32 %v3203_v1, %v2600_v44 }
 0x209   :  { %v2832_v62 = vmul.f32 %v3199_v47, %v2608_v20  ;;  %v2857_v14 = vmul.f32 %v3206_v7, %v2598_v22 }
 0x20a   :  { %3190 = vst [vmem:[#allocation27_spill] sm:$0xff] %v2802_v2  ;;  %3196 = vst [vmem:[#allocation29_spill] sm:$0xff] %v2822_v43  ;;  %v3201_v2 = vunpack.c.l.bf16 %v2526_v5  ;;  %v3207_v43 = vunpack.c.l.bf16 %v2536_v32  ;;  %v3209_v5 = vunpack.c.h.bf16 %v2536_v32  ;;  %v3215_v32 = vunpack.c.h.bf16 %v2544_v34 }
 0x20b   :  { %3198 = vst [vmem:[#allocation30_spill] sm:$0xff] %v2827_v56  ;;  %3204 = vst [vmem:[#allocation32_spill] sm:$0xff] %v2847_v12  ;;  %v3205_v56 = vunpack.c.l.bf16 %v2528_v18  ;;  %v3211_v12 = vunpack.c.l.bf16 %v2538_v31  ;;  %v3212_v18 = vunpack.c.h.bf16 %v2538_v31  ;;  %v3218_v31 = vunpack.c.h.bf16 %v2546_v23 }
 0x20c   :  { %v2842_v35 = vmul.f32 %v3201_v2, %v2611_v51  ;;  %v2862_v2 = vmul.f32 %v3207_v43, %v2611_v51  ;;  %v2867_v1 = vmul.f32 %v3209_v5, %v2600_v44  ;;  %v2887_v5 = vmul.f32 %v3215_v32, %v2600_v44 }
 0x20d   :  { %v2852_v47 = vmul.f32 %v3205_v56, %v2608_v20  ;;  %v2872_v56 = vmul.f32 %v3211_v12, %v2608_v20  ;;  %v2877_v7 = vmul.f32 %v3212_v18, %v2598_v22  ;;  %v2897_v18 = vmul.f32 %v3218_v31, %v2598_v22 }
 0x20e   :  { %3202 = vst [vmem:[#allocation31_spill] sm:$0xff] %v2842_v35  ;;  %3208 = vst [vmem:[#allocation33_spill] sm:$0xff] %v2862_v2  ;;  %v3213_v35 = vunpack.c.l.bf16 %v2544_v34  ;;  %v3219_v2 = vunpack.c.l.bf16 %v2552_v54  ;;  %v3221_v34 = vunpack.c.h.bf16 %v2552_v54  ;;  %v3226_v54 = vunpack.c.h.bf16 %v2560_v50 }
 0x20f   :  { %3210 = vst [vmem:[#allocation34_spill] sm:$0xff] %v2867_v1  ;;  %3216 = vst [vmem:[#allocation36_spill] sm:$0xff] %v2887_v5  ;;  %v3217_v1 = vunpack.c.l.bf16 %v2546_v23  ;;  %v3223_v5 = vunpack.c.l.bf16 %v2554_v4  ;;  %v3224_v23 = vunpack.c.h.bf16 %v2554_v4  ;;  %v3229_v4 = vunpack.c.h.bf16 %v2562_v58 }
 0x210   :  { %v2882_v43 = vmul.f32 %v3213_v35, %v2611_v51  ;;  %v2902_v35 = vmul.f32 %v3219_v2, %v2611_v51  ;;  %v2907_v32 = vmul.f32 %v3221_v34, %v2600_v44  ;;  %v2927_v34 = vmul.f32 %v3226_v54, %v2600_v44 }
 0x211   :  { %v2892_v12 = vmul.f32 %v3217_v1, %v2608_v20  ;;  %v2912_v1 = vmul.f32 %v3223_v5, %v2608_v20  ;;  %v2917_v31 = vmul.f32 %v3224_v23, %v2598_v22  ;;  %v2937_v23 = vmul.f32 %v3229_v4, %v2598_v22 }
 0x212   :  { %3214 = vst [vmem:[#allocation35_spill] sm:$0xff] %v2882_v43  ;;  %3220 = vst [vmem:[#allocation37_spill] sm:$0xff] %v2902_v35  ;;  %v3225_v43 = vunpack.c.l.bf16 %v2560_v50  ;;  %v3231_v35 = vunpack.c.l.bf16 %v2568_v30  ;;  %v3233_v50 = vunpack.c.h.bf16 %v2568_v30  ;;  %v3239_v30 = vunpack.c.h.bf16 %v2576_v36 }
 0x213   :  { %3222 = vst [vmem:[#allocation38_spill] sm:$0xff] %v2907_v32  ;;  %3227 = vst [vmem:[#allocation39_spill] sm:$0xff] %v2927_v34  ;;  %v3228_v32 = vunpack.c.l.bf16 %v2562_v58  ;;  %v3235_v34 = vunpack.c.l.bf16 %v2570_v0  ;;  %v3236_v58 = vunpack.c.h.bf16 %v2570_v0  ;;  %v3242_v0 = vunpack.c.h.bf16 %v2578_v60 }
 0x214   :  { %v2922_v2 = vmul.f32 %v3225_v43, %v2611_v51  ;;  %3230 = vst [vmem:[#allocation40_spill] sm:$0xff] %v2937_v23  ;;  %v2942_v43 = vmul.f32 %v3231_v35, %v2611_v51  ;;  %v2947_v54 = vmul.f32 %v3233_v50, %v2600_v44  ;;  %v3237_v23 = vunpack.c.l.bf16 %v2576_v36 }
 0x215   :  { %v2932_v5 = vmul.f32 %v3228_v32, %v2608_v20  ;;  %v2952_v32 = vmul.f32 %v3235_v34, %v2608_v20  ;;  %v2957_v4 = vmul.f32 %v3236_v58, %v2598_v22  ;;  %v2967_v50 = vmul.f32 %v3239_v30, %v2600_v44 }
 0x216   :  { %3232 = vst [vmem:[#allocation41_spill] sm:$0xff] %v2942_v43  ;;  %3234 = vst [vmem:[#allocation42_spill] sm:$0xff] %v2947_v54  ;;  %v2962_v35 = vmul.f32 %v3237_v23, %v2611_v51  ;;  %v3241_v54 = vunpack.c.l.bf16 %v2578_v60  ;;  %v2977_v58 = vmul.f32 %v3242_v0, %v2598_v22  ;;  %v3243_v43 = vunpack.c.l.bf16 %v2584_v9 }
 0x217   :  { %3240 = vst [vmem:[#allocation44_spill] sm:$0xff] %v2967_v50  ;;  %v3244_v36 = vunpack.c.h.bf16 %v2584_v9  ;;  %v3246_v50 = vunpack.c.l.bf16 %v2590_v11  ;;  %v3247_v60 = vunpack.c.h.bf16 %v2590_v11  ;;  %v3249_v9 = vunpack.c.h.bf16 %v2592_v10 }
 0x218   :  { %3238 = vst [vmem:[#allocation43_spill] sm:$0xff] %v2962_v35  ;;  %v2972_v34 = vmul.f32 %v3241_v54, %v2608_v20  ;;  %v2982_v23 = vmul.f32 %v3243_v43, %v2611_v51  ;;  %v3248_v35 = vunpack.c.l.bf16 %v2592_v10  ;;  %v1168_v11 = vadd.f32 %v2636_v39, %v2666_v16 }
 0x219   :  { %v2987_v30 = vmul.f32 %v3244_v36, %v2600_v44  ;;  %v2992_v54 = vmul.f32 %v3246_v50, %v2608_v20  ;;  %v2997_v0 = vmul.f32 %v3247_v60, %v2598_v22  ;;  %v3007_v36 = vmul.f32 %v3249_v9, %v2600_v44 }
 0x21a   :  { %v3002_v43 = vmul.f32 %v3248_v35, %v2611_v51  ;;  %v1159_v20 = vadd.f32 %v2626_v55, %v2656_v48  ;;  %v1177_v22 = vadd.f32 %v2681_v63, %v2676_v19  ;;  %v1186_v51 = vadd.f32 %v2701_v29, %v2696_v52  ;;  %v3250_v52 = vld [vmem:[#allocation19_spill] sm:$0xff] }
 0x21b   :  { %3245 = vst [vmem:[#allocation45_spill] sm:$0xff] %v2987_v30  ;;  %v1150_v30 = vadd.f32 %v2616_v28, %v2646_v24  ;;  %v1195_v10 = vadd.f32 %v2721_v61, %v2716_v26  ;;  %v1204_v28 = vadd.f32 %v2741_v13, %v2736_v46  ;;  %v1213_v55 = vadd.f32 %v1099_v27, %v1098_v38  ;;  %v3251_v26 = vld [vmem:[#allocation20_spill] sm:$0xff]  ;;  %v3252_v46 = vld [vmem:[#allocation21_spill] sm:$0xff]  ;;  %v3253_v13 = vld [vmem:[#allocation22_spill] sm:$0xff] }
 0x21c   :  { %v1160_v35 = vadd.f32 %v1159_v20, %v2661_v21  ;;  %v1169_v24 = vadd.f32 %v1168_v11, %v2671_v3  ;;  %v1178_v39 = vadd.f32 %v1177_v22, %v2686_v33  ;;  %v1187_v48 = vadd.f32 %v1186_v51, %v2706_v6  ;;  %v3254_v27 = vld [vmem:[#allocation23_spill] sm:$0xff] }
 0x21d   :  { %v1151_v44 = vadd.f32 %v1150_v30, %v2651_v8  ;;  %v1196_v16 = vadd.f32 %v1195_v10, %v2726_v45  ;;  %v1205_v8 = vadd.f32 %v1204_v28, %v2746_v41  ;;  %v1214_v21 = vadd.f32 %v1213_v55, %v2762_v37 }
 0x21e   :  { %v1161_v63 = vadd.f32 %v1160_v35, %v2631_v17  ;;  %v1170_v29 = vadd.f32 %v1169_v24, %v3250_v52  ;;  %v1179_v61 = vadd.f32 %v1178_v39, %v3251_v26  ;;  %v1188_v3 = vadd.f32 %v1187_v48, %v3252_v46 }
 0x21f   :  { %v1152_v19 = vadd.f32 %v1151_v44, %v2621_v53  ;;  %v1197_v33 = vadd.f32 %v1196_v16, %v3253_v13  ;;  %v1206_v45 = vadd.f32 %v1205_v8, %v2751_v25  ;;  %v1215_v53 = vadd.f32 %v1214_v21, %v3254_v27 }
 0x220   :  { %v1162_v6 = vrot.slane %v1161_v63, 4  ;;  %v1171_v50 = vrot.slane %v1170_v29, 4  ;;  %v1180_v17 = vrot.slane %v1179_v61, 4  ;;  %v1189_v30 = vrot.slane %v1188_v3, 4 }
 0x221   :  { %v1153_v38 = vrot.slane %v1152_v19, 4  ;;  %v1198_v41 = vrot.slane %v1197_v33, 4  ;;  %v1207_v9 = vrot.slane %v1206_v45, 4  ;;  %v1216_v20 = vrot.slane %v1215_v53, 4 }
 0x222   :  { %v1163_v37 = vadd.f32 %v1162_v6, %v1161_v63  ;;  %v1172_v11 = vadd.f32 %v1171_v50, %v1170_v29  ;;  %v1181_v22 = vadd.f32 %v1180_v17, %v1179_v61  ;;  %v1190_v51 = vadd.f32 %v1189_v30, %v1188_v3 }
 0x223   :  { %v1154_v60 = vadd.f32 %v1153_v38, %v1152_v19  ;;  %v1199_v10 = vadd.f32 %v1198_v41, %v1197_v33  ;;  %v1208_v28 = vadd.f32 %v1207_v9, %v1206_v45  ;;  %v1217_v55 = vadd.f32 %v1216_v20, %v1215_v53 }
 0x224   :  { %v1164_v35 = vrot.slane %v1163_v37, 2  ;;  %v1173_v24 = vrot.slane %v1172_v11, 2  ;;  %v1182_v25 = vrot.slane %v1181_v22, 2  ;;  %v1191_v39 = vrot.slane %v1190_v51, 2 }
 0x225   :  { %v1155_v44 = vrot.slane %v1154_v60, 2  ;;  %v1200_v48 = vrot.slane %v1199_v10, 2  ;;  %v1209_v21 = vrot.slane %v1208_v28, 2  ;;  %v1218_v52 = vrot.slane %v1217_v55, 2 }
 0x226   :  { %v1165_v8 = vadd.f32 %v1164_v35, %v1163_v37  ;;  %v1174_v19 = vadd.f32 %v1173_v24, %v1172_v11  ;;  %v1183_v63 = vadd.f32 %v1182_v25, %v1181_v22  ;;  %v1192_v26 = vadd.f32 %v1191_v39, %v1190_v51  ;;  %v3255_v11 = vld [vmem:[#allocation24_spill] sm:$0xff]  ;;  %v3257_v25 = vld [vmem:[#allocation27_spill] sm:$0xff] }
 0x227   :  { %v1156_v16 = vadd.f32 %v1155_v44, %v1154_v60  ;;  %v1201_v46 = vadd.f32 %v1200_v48, %v1199_v10  ;;  %v1210_v3 = vadd.f32 %v1209_v21, %v1208_v28  ;;  %v1219_v13 = vadd.f32 %v1218_v52, %v1217_v55  ;;  %v3256_v55 = vld [vmem:[#allocation25_spill] sm:$0xff] }
 0x228   :  { %v1166_v61 = vrot.slane %v1165_v8, 1  ;;  %v1175_v33 = vrot.slane %v1174_v19, 1  ;;  %v1184_v38 = vrot.slane %v1183_v63, 1  ;;  %v1193_v6 = vrot.slane %v1192_v26, 1  ;;  %v3264_v21 = vld [vmem:[#allocation37_spill] sm:$0xff] }
 0x229   :  { %v1157_v29 = vrot.slane %v1156_v16, 1  ;;  %v1202_v45 = vrot.slane %v1201_v46, 1  ;;  %v1211_v50 = vrot.slane %v1210_v3, 1  ;;  %v1220_v17 = vrot.slane %v1219_v13, 1 }
 0x22a   :  { %v3041_v53 = vadd.f32 %v1166_v61, %v1165_v8  ;;  %v3043_v30 = vadd.f32 %v1175_v33, %v1174_v19  ;;  %v3045_v41 = vadd.f32 %v1184_v38, %v1183_v63  ;;  %v3047_v60 = vadd.f32 %v1193_v6, %v1192_v26  ;;  %v3266_v63 = vld [vmem:[#allocation32_spill] sm:$0xff]  ;;  %v3270_v38 = vld [vmem:[#allocation39_spill] sm:$0xff] }
 0x22b   :  { %v3039_v27 = vadd.f32 %v1157_v29, %v1156_v16  ;;  %v3049_v37 = vadd.f32 %v1202_v45, %v1201_v46  ;;  %v3051_v9 = vadd.f32 %v1211_v50, %v1210_v3  ;;  %v3053_v20 = vadd.f32 %v1220_v17, %v1219_v13  ;;  %v3262_v16 = vld [vmem:[#allocation26_spill] sm:$0xff]  ;;  %v3268_v46 = vld [vmem:[#allocation36_spill] sm:$0xff] }
 0x22c   :  { %v1222_v22 = vadd.f32 %v3255_v11, %v2772_v57  ;;  %v1231_v51 = vadd.f32 %v2797_v40, %v2792_v42  ;;  %v1240_v10 = vadd.f32 %v2817_v49, %v2812_v15  ;;  %v1249_v44 = vadd.f32 %v2837_v59, %v2832_v62  ;;  %v3258_v40 = vld [vmem:[#allocation29_spill] sm:$0xff]  ;;  %v3259_v49 = vld [vmem:[#allocation31_spill] sm:$0xff]  ;;  %v3269_v13 = vld [vmem:[#allocation38_spill] sm:$0xff] }
 0x22d   :  { %v1258_v35 = vadd.f32 %v2857_v14, %v2852_v47  ;;  %v1267_v28 = vadd.f32 %v2877_v7, %v2872_v56  ;;  %v1276_v57 = vadd.f32 %v2897_v18, %v2892_v12  ;;  %v1285_v42 = vadd.f32 %v2917_v31, %v2912_v1  ;;  %v3260_v59 = vld [vmem:[#allocation33_spill] sm:$0xff]  ;;  %v3261_v47 = vld [vmem:[#allocation35_spill] sm:$0xff]  ;;  %v3263_v7 = vld [vmem:[#allocation28_spill] sm:$0xff] }
 0x22e   :  { %v1223_v24 = vadd.f32 %v1222_v22, %v3256_v55  ;;  %v1232_v39 = vadd.f32 %v1231_v51, %v3257_v25  ;;  %v1241_v15 = vadd.f32 %v1240_v10, %v3258_v40  ;;  %v1250_v62 = vadd.f32 %v1249_v44, %v3259_v49  ;;  %v3265_v12 = vld [vmem:[#allocation30_spill] sm:$0xff] }
 0x22f   :  { %v1259_v48 = vadd.f32 %v1258_v35, %v3260_v59  ;;  %v1268_v14 = vadd.f32 %v1267_v28, %v3261_v47  ;;  %v1277_v52 = vadd.f32 %v1276_v57, %v3264_v21  ;;  %v1286_v19 = vadd.f32 %v1285_v42, %v2922_v2  ;;  %v3267_v31 = vld [vmem:[#allocation34_spill] sm:$0xff] }
 0x230   :  { %v1224_v56 = vadd.f32 %v1223_v24, %v3262_v16  ;;  %v1233_v8 = vadd.f32 %v1232_v39, %v3263_v7  ;;  %v1242_v18 = vadd.f32 %v1241_v15, %v3265_v12  ;;  %v1251_v1 = vadd.f32 %v1250_v62, %v3266_v63 }
 0x231   :  { %v1260_v26 = vadd.f32 %v1259_v48, %v3267_v31  ;;  %v1269_v29 = vadd.f32 %v1268_v14, %v3268_v46  ;;  %v1278_v33 = vadd.f32 %v1277_v52, %v3269_v13  ;;  %v1287_v6 = vadd.f32 %v1286_v19, %v3270_v38 }
 0x232   :  { %v1225_v61 = vrot.slane %v1224_v56, 4  ;;  %v1234_v3 = vrot.slane %v1233_v8, 4  ;;  %v1243_v45 = vrot.slane %v1242_v18, 4  ;;  %v1252_v50 = vrot.slane %v1251_v1, 4 }
 0x233   :  { %v1261_v17 = vrot.slane %v1260_v26, 4  ;;  %v1270_v11 = vrot.slane %v1269_v29, 4  ;;  %v1279_v51 = vrot.slane %v1278_v33, 4  ;;  %v1288_v10 = vrot.slane %v1287_v6, 4 }
 0x234   :  { %v1226_v22 = vadd.f32 %v1225_v61, %v1224_v56  ;;  %v1235_v2 = vadd.f32 %v1234_v3, %v1233_v8  ;;  %v1244_v44 = vadd.f32 %v1243_v45, %v1242_v18  ;;  %v1253_v35 = vadd.f32 %v1252_v50, %v1251_v1  ;;  %v3271_v45 = vld [vmem:[#allocation40_spill] sm:$0xff] }
 0x235   :  { %v1262_v28 = vadd.f32 %v1261_v17, %v1260_v26  ;;  %v1271_v55 = vadd.f32 %v1270_v11, %v1269_v29  ;;  %v1280_v39 = vadd.f32 %v1279_v51, %v1278_v33  ;;  %v1289_v57 = vadd.f32 %v1288_v10, %v1287_v6  ;;  %v3272_v10 = vld [vmem:[#allocation41_spill] sm:$0xff] }
 0x236   :  { %v1227_v24 = vrot.slane %v1226_v22, 2  ;;  %v1236_v25 = vrot.slane %v1235_v2, 2  ;;  %v1245_v42 = vrot.slane %v1244_v44, 2  ;;  %v1254_v40 = vrot.slane %v1253_v35, 2 }
 0x237   :  { %v1263_v15 = vrot.slane %v1262_v28, 2  ;;  %v1272_v49 = vrot.slane %v1271_v55, 2  ;;  %v1281_v48 = vrot.slane %v1280_v39, 2  ;;  %v1290_v47 = vrot.slane %v1289_v57, 2 }
 0x238   :  { %v1228_v62 = vadd.f32 %v1227_v24, %v1226_v22  ;;  %v1237_v59 = vadd.f32 %v1236_v25, %v1235_v2  ;;  %v1246_v14 = vadd.f32 %v1245_v42, %v1244_v44  ;;  %v1255_v16 = vadd.f32 %v1254_v40, %v1253_v35  ;;  %v3273_v35 = vld [vmem:[#allocation43_spill] sm:$0xff]  ;;  %v3276_v25 = vld [vmem:[#allocation45_spill] sm:$0xff] }
 0x239   :  { %v1264_v56 = vadd.f32 %v1263_v15, %v1262_v28  ;;  %v1273_v7 = vadd.f32 %v1272_v49, %v1271_v55  ;;  %v1282_v52 = vadd.f32 %v1281_v48, %v1280_v39  ;;  %v1291_v19 = vadd.f32 %v1290_v47, %v1289_v57 }
 0x23a   :  { %v1229_v8 = vrot.slane %v1228_v62, 1  ;;  %v1238_v21 = vrot.slane %v1237_v59, 1  ;;  %v1247_v12 = vrot.slane %v1246_v14, 1  ;;  %v1256_v18 = vrot.slane %v1255_v16, 1 }
 0x23b   :  { %v1265_v63 = vrot.slane %v1264_v56, 1  ;;  %v1274_v1 = vrot.slane %v1273_v7, 1  ;;  %v1283_v46 = vrot.slane %v1282_v52, 1  ;;  %v1292_v29 = vrot.slane %v1291_v19, 1 }
 0x23c   :  { %v1230_v31 = vadd.f32 %v1229_v8, %v1228_v62  ;;  %v1239_v26 = vadd.f32 %v1238_v21, %v1237_v59  ;;  %v1248_v61 = vadd.f32 %v1247_v12, %v1246_v14  ;;  %v1257_v3 = vadd.f32 %v1256_v18, %v1255_v16 }
 0x23d   :  { %v1266_v13 = vadd.f32 %v1265_v63, %v1264_v56  ;;  %v1275_v33 = vadd.f32 %v1274_v1, %v1273_v7  ;;  %v1284_v38 = vadd.f32 %v1283_v46, %v1282_v52  ;;  %v1293_v6 = vadd.f32 %v1292_v29, %v1291_v19 }
 0x23e   :  { %v1294_v50 = vadd.f32 %v3271_v45, %v2932_v5  ;;  %v1303_v17 = vadd.f32 %v2957_v4, %v2952_v32  ;;  %v1312_v11 = vadd.f32 %v2977_v58, %v2972_v34  ;;  %v1321_v22 = vadd.f32 %v2997_v0, %v2992_v54  ;;  %v3274_v0 = vld [vmem:[#allocation42_spill] sm:$0xff] }
 0x23f   :  { %v1350_v2 = vsel %vm328_vm0, %v3041_v53, %v3039_v27  ;;  %v1357_v51 = vsel %vm328_vm0, %v1239_v26, %v1230_v31  ;;  %v3275_v53 = vld [vmem:[#allocation44_spill] sm:$0xff] }
 0x240   :  { %v1295_v44 = vadd.f32 %v1294_v50, %v3272_v10  ;;  %v1304_v28 = vadd.f32 %v1303_v17, %v3273_v35  ;;  %v1351_v5 = vsel %vm331_vm1, %v3043_v30, %v1350_v2  ;;  %v1358_v32 = vsel %vm331_vm1, %v1248_v61, %v1357_v51 }
 0x241   :  { %v1313_v4 = vadd.f32 %v1312_v11, %v2982_v23  ;;  %v1322_v34 = vadd.f32 %v1321_v22, %v3002_v43  ;;  %v1352_v58 = vsel %vm334_vm2, %v3045_v41, %v1351_v5  ;;  %v1359_v54 = vsel %vm334_vm2, %v1257_v3, %v1358_v32 }
 0x242   :  { %v1296_v27 = vadd.f32 %v1295_v44, %v3274_v0  ;;  %v1305_v55 = vadd.f32 %v1304_v28, %v3275_v53  ;;  %v1353_v24 = vsel %vm337_vm3, %v3047_v60, %v1352_v58  ;;  %v1360_v30 = vsel %vm337_vm3, %v1266_v13, %v1359_v54 }
 0x243   :  { %v1314_v39 = vadd.f32 %v1313_v4, %v3276_v25  ;;  %v1323_v23 = vadd.f32 %v1322_v34, %v3007_v36  ;;  %v1354_v43 = vsel %vm340_vm4, %v3049_v37, %v1353_v24  ;;  %v1361_v41 = vsel %vm340_vm4, %v1275_v33, %v1360_v30 }
 0x244   :  { %v1297_v57 = vrot.slane %v1296_v27, 4  ;;  %v1306_v42 = vrot.slane %v1305_v55, 4  ;;  %v1355_v40 = vsel %vm343_vm5, %v3051_v9, %v1354_v43  ;;  %v1362_v15 = vsel %vm343_vm5, %v1284_v38, %v1361_v41 }
 0x245   :  { %v1315_v49 = vrot.slane %v1314_v39, 4  ;;  %v1324_v60 = vrot.slane %v1323_v23, 4  ;;  %v1356_v62 = vsel %vm346_vm6, %v3053_v20, %v1355_v40  ;;  %v1363_v59 = vsel %vm346_vm6, %v1293_v6, %v1362_v15 }
 0x246   :  { %v1298_v36 = vadd.f32 %v1297_v57, %v1296_v27  ;;  %v1307_v48 = vadd.f32 %v1306_v42, %v1305_v55  ;;  %1370 = vst [vmem:[#allocation13] sm:$0xff] %v1356_v62  ;;  %1371 = vst [vmem:[#allocation13 + $0x8] sm:$0xff] %v1363_v59 }
 0x247   :  { %v1316_v37 = vadd.f32 %v1315_v49, %v1314_v39  ;;  %v1325_v47 = vadd.f32 %v1324_v60, %v1323_v23 }
 0x248   :  { %v1299_v14 = vrot.slane %v1298_v36, 2  ;;  %v1308_v16 = vrot.slane %v1307_v48, 2 }
 0x249   :  { %v1317_v56 = vrot.slane %v1316_v37, 2  ;;  %v1326_v7 = vrot.slane %v1325_v47, 2 }
 0x24a   :  { %v1300_v9 = vadd.f32 %v1299_v14, %v1298_v36  ;;  %v1309_v8 = vadd.f32 %v1308_v16, %v1307_v48 }
 0x24b   :  { %v1318_v21 = vadd.f32 %v1317_v56, %v1316_v37  ;;  %v1327_v52 = vadd.f32 %v1326_v7, %v1325_v47 }
 0x24c   :  { %v1301_v19 = vrot.slane %v1300_v9, 1  ;;  %v1310_v12 = vrot.slane %v1309_v8, 1 }
 0x24d   :  { %v1319_v18 = vrot.slane %v1318_v21, 1  ;;  %v1328_v20 = vrot.slane %v1327_v52, 1 }
 0x24e   :  { %v1302_v63 = vadd.f32 %v1301_v19, %v1300_v9  ;;  %v1311_v1 = vadd.f32 %v1310_v12, %v1309_v8 }
 0x24f   :  { %v1320_v31 = vadd.f32 %v1319_v18, %v1318_v21  ;;  %v1329_v26 = vadd.f32 %v1328_v20, %v1327_v52 }
 0x250   :  { %v1364_v46 = vsel %vm328_vm0, %v1311_v1, %v1302_v63 }
 0x251   :  { %v1365_v29 = vsel %vm331_vm1, %v1320_v31, %v1364_v46 }
 0x252   :  { %v1366_v61 = vsel %vm334_vm2, %v1329_v26, %v1365_v29 }
 0x253   :  { %1372 = vst [vmem:[#allocation13 + $0x10] sm:$0xf] %v1366_v61 }
 0x254   :  { %2066 = shalt.err (!%p2063_p6)
}
 0x255   :  { %s2095_s24 = smov 128   ;;  %s2096_s25 = smov 8  }
 0x256   :  { %1384 = dma.vmem_to_hbm [thread:$0]  %s1379_s3, 384, %s3139_s8, [#allocation4], %s2095_s24, %s2095_s24, %s2096_s25  }
 0x257   :  { %2083 = dma.done.wait [#allocation4], 384  }
 0x258   :  { %2084 = vsyncadd [#allocation4], 4294966912 }
 0x259   :  { %1388 = vsyncpa [#allocation3], 1 }
 0x25a   :  { %1389 = vsyncpa [#allocation6], 1 }
 0x25b   :  { %1390 = vsyncpa [#allocation9], 1 }
 0x25c   :  { %1391 = vsyncpa [#allocation12], 1 }
 0x25d   :  { %1392 = vsyncpa [#allocation4], 1 }

</bundles_post_ra>
